<compile_context>
chip_gen: v5e
topology: v5e:2x2
jax: 0.10.0
libtpu: 0.0.40
codegen_flags: <defaults>
</compile_context>

<pallas_src>
import functools

import jax
import jax.numpy as jnp
from jax.experimental import pallas as pl
from jax.experimental.pallas import tpu as pltpu


# ---------------------------------------------------------------------------
# Tiling configuration (safe for v5e / v6e / v7x VMEM with double-buffering)
# ---------------------------------------------------------------------------
_TILE_M_MAX = 512
_TILE_N_MAX = 256
_TILE_K_MAX = 512
_VMEM_LIMIT_BYTES = 32 * 1024 * 1024


def _round_up(x, m):
    return (x + m - 1) // m * m


def _pad2d(a, rows, cols):
    pr, pc = rows - a.shape[0], cols - a.shape[1]
    if pr or pc:
        a = jnp.pad(a, ((0, pr), (0, pc)))
    return a


# ---------------------------------------------------------------------------
# Pallas kernels:  acc = sum_k x_tile @ w_tile (+ xs @ ws) ;
#                  out = relu?(acc + bias (+ residual))
# ---------------------------------------------------------------------------
def _make_kernel(mode: str, apply_relu: bool):
    """mode: 'none' | 'add' (tiled residual input) | 'project' (in-kernel 1x1)."""

    def _finalize(acc_ref, bias_ref, o_ref, extra=None):
        y = acc_ref[...] + bias_ref[...]
        if extra is not None:
            y = y + extra
        if apply_relu:
            y = jnp.maximum(y, 0.0)
        o_ref[...] = y.astype(o_ref.dtype)

    if mode == "project":
        def kernel(x_ref, w_ref, xs_ref, ws_ref, bias_ref, o_ref, acc_ref):
            k = pl.program_id(2)

            @pl.when(k == 0)
            def _():
                # Shortcut 1x1 projection (BN scale folded into ws) seeds acc.
                acc_ref[...] = jnp.dot(xs_ref[...], ws_ref[...],
                                       preferred_element_type=jnp.float32)

            acc_ref[...] += jnp.dot(x_ref[...], w_ref[...],
                                    preferred_element_type=jnp.float32)

            @pl.when(k == pl.num_programs(2) - 1)
            def _():
                _finalize(acc_ref, bias_ref, o_ref)
        return kernel

    if mode == "add":
        def kernel(x_ref, w_ref, res_ref, bias_ref, o_ref, acc_ref):
            k = pl.program_id(2)

            @pl.when(k == 0)
            def _():
                acc_ref[...] = jnp.zeros_like(acc_ref)

            acc_ref[...] += jnp.dot(x_ref[...], w_ref[...],
                                    preferred_element_type=jnp.float32)

            @pl.when(k == pl.num_programs(2) - 1)
            def _():
                _finalize(acc_ref, bias_ref, o_ref,
                          extra=res_ref[...].astype(jnp.float32))
        return kernel

    def kernel(x_ref, w_ref, bias_ref, o_ref, acc_ref):
        k = pl.program_id(2)

        @pl.when(k == 0)
        def _():
            acc_ref[...] = jnp.zeros_like(acc_ref)

        acc_ref[...] += jnp.dot(x_ref[...], w_ref[...],
                                preferred_element_type=jnp.float32)

        @pl.when(k == pl.num_programs(2) - 1)
        def _():
            _finalize(acc_ref, bias_ref, o_ref)
    return kernel


def fused_conv_matmul(x2d, w2d, bias, *, residual=None, shortcut=None,
                      apply_relu=False, out_dtype=jnp.float32):
    """y = relu?( x2d @ w2d + bias [+ residual | + xs @ ws] ), tiled over M/N/K.

    x2d: (M, K) im2col patches (cast to bf16).  w2d: (K, N) weights with the
    BN scale already folded in.  bias: (N,) f32 folded-BN bias.
    residual: (M, N) added at finalize.  shortcut: (xs (M, Cs), ws (Cs, N))
    1x1 projection computed in-kernel and accumulated.
    """
    M, K = x2d.shape
    K2, N = w2d.shape
    assert K == K2

    tm = min(_TILE_M_MAX, _round_up(M, 8))
    tn = min(_TILE_N_MAX, _round_up(N, 128))          # lane-dense output
    tk = K if K <= _TILE_K_MAX else _TILE_K_MAX

    Mp, Np, Kp = _round_up(M, tm), _round_up(N, tn), _round_up(K, tk)
    gm, gn, gk = Mp // tm, Np // tn, Kp // tk

    xp = _pad2d(x2d.astype(jnp.bfloat16), Mp, Kp)
    wp = _pad2d(w2d.astype(jnp.bfloat16), Kp, Np)
    bp = _pad2d(bias.reshape(1, N).astype(jnp.float32), 1, Np)

    args = [xp, wp]
    in_specs = [
        pl.BlockSpec((tm, tk), lambda i, j, k: (i, k)),
        pl.BlockSpec((tk, tn), lambda i, j, k: (k, j)),
    ]

    if shortcut is not None:
        xs, ws = shortcut
        Cs = xs.shape[1]
        args += [_pad2d(xs.astype(jnp.bfloat16), Mp, Cs),
                 _pad2d(ws.astype(jnp.bfloat16), Cs, Np)]
        in_specs += [
            pl.BlockSpec((tm, Cs), lambda i, j, k: (i, 0)),
            pl.BlockSpec((Cs, tn), lambda i, j, k: (0, j)),
        ]
        mode = "project"
    elif residual is not None:
        args.append(_pad2d(residual.astype(jnp.bfloat16), Mp, Np))
        in_specs.append(pl.BlockSpec((tm, tn), lambda i, j, k: (i, j)))
        mode = "add"
    else:
        mode = "none"

    args.append(bp)
    in_specs.append(pl.BlockSpec((1, tn), lambda i, j, k: (0, j)))

    out = pl.pallas_call(
        _make_kernel(mode, apply_relu),
        out_shape=jax.ShapeDtypeStruct((Mp, Np), out_dtype),
        grid=(gm, gn, gk),
        in_specs=in_specs,
        out_specs=pl.BlockSpec((tm, tn), lambda i, j, k: (i, j)),
        scratch_shapes=[pltpu.VMEM((tm, tn), jnp.float32)],
        compiler_params=pltpu.CompilerParams(
            dimension_semantics=("parallel", "parallel", "arbitrary"),
            vmem_limit_bytes=_VMEM_LIMIT_BYTES),
    )(*args)
    return out[:M, :N]


# ---------------------------------------------------------------------------
# Glue: im2col patch extraction, weight / BN folding (plain JAX)
# ---------------------------------------------------------------------------
def _extract_patches_3x3(x_nhwc, stride):
    """(B,H,W,C) -> (B*Ho*Wo, 9*C) patches for a 3x3 conv, padding=1."""
    B, H, W, C = x_nhwc.shape
    Ho = (H + 2 - 3) // stride + 1
    Wo = (W + 2 - 3) // stride + 1
    xp = jnp.pad(x_nhwc, ((0, 0), (1, 1), (1, 1), (0, 0)))
    cols = []
    for ky in range(3):
        for kx in range(3):
            cols.append(
                xp[:, ky:ky + (Ho - 1) * stride + 1:stride,
                      kx:kx + (Wo - 1) * stride + 1:stride, :])
    patches = jnp.concatenate(cols, axis=-1)          # (B, Ho, Wo, 9*C) bf16
    return patches.reshape(B * Ho * Wo, 9 * C), Ho, Wo


def _fold_bn(gamma, beta, mean, var, eps=1e-5):
    scale = gamma / jnp.sqrt(var + eps)
    bias = beta - mean * scale
    return scale, bias


def _w3x3_to_mat(w_oihw):
    """PyTorch (Cout,Cin,3,3) -> (9*Cin, Cout) matching patch ordering."""
    Cout, Cin = w_oihw.shape[:2]
    return jnp.transpose(w_oihw, (2, 3, 1, 0)).reshape(9 * Cin, Cout)


# ---------------------------------------------------------------------------
# ResBlock forward (Pallas-backed)
# ---------------------------------------------------------------------------
@functools.partial(jax.jit, static_argnames=("stride",))
def resblock_forward(x_nchw, params, stride=1):
    # TODO(synk): for stacked blocks, keep activations NHWC end-to-end and
    # hoist these layout transposes out of the per-block path.
    x = jnp.transpose(x_nchw, (0, 2, 3, 1)).astype(jnp.bfloat16)   # NHWC bf16
    B, H, W, Cin = x.shape
    Cout = params["w1"].shape[0]
    Ho = (H + 2 - 3) // stride + 1
    Wo = (W + 2 - 3) // stride + 1
    M = B * Ho * Wo

    # ---- conv1 + bn1 + relu  (BN scale folded into the weight) ----------
    p1, _, _ = _extract_patches_3x3(x, stride)
    s1, b1 = _fold_bn(params["g1"], params["b1"], params["m1"], params["v1"])
    w1 = _w3x3_to_mat(params["w1"]) * s1[None, :]
    out1 = fused_conv_matmul(p1, w1, b1, apply_relu=True,
                             out_dtype=jnp.bfloat16)               # (M, Cout)

    # ---- conv2 + bn2 + shortcut + relu ----------------------------------
    p2, _, _ = _extract_patches_3x3(out1.reshape(B, Ho, Wo, Cout), 1)
    s2, b2 = _fold_bn(params["g2"], params["b2"], params["m2"], params["v2"])
    w2 = _w3x3_to_mat(params["w2"]) * s2[None, :]

    if stride != 1 or Cin != Cout:
        # 1x1 strided projection + BN, fused into the conv2 kernel.
        xs = x[:, ::stride, ::stride, :].reshape(M, Cin)
        ss, bs = _fold_bn(params["gs"], params["bs"], params["ms"], params["vs"])
        ws = jnp.transpose(params["ws"][:, :, 0, 0], (1, 0)) * ss[None, :]
        out2 = fused_conv_matmul(p2, w2, b2 + bs, shortcut=(xs, ws),
                                 apply_relu=True)
    else:
        out2 = fused_conv_matmul(p2, w2, b2, residual=x.reshape(M, Cout),
                                 apply_relu=True)

    out = out2.reshape(B, Ho, Wo, Cout).astype(jnp.float32)
    return jnp.transpose(out, (0, 3, 1, 2))                        # NCHW


# ---------------------------------------------------------------------------
# Pure-JAX f32 reference (for correctness check)
# ---------------------------------------------------------------------------
def resblock_reference(x, params, stride=1, eps=1e-5):
    def conv(x, w, s, pad):
        return jax.lax.conv_general_dilated(
            x, w, (s, s), [(pad, pad), (pad, pad)],
            dimension_numbers=("NCHW", "OIHW", "NCHW"))

    def bn(x, g, b, m, v):
        c = (None, slice(None), None, None)
        return (x - m[c]) / jnp.sqrt(v[c] + eps) * g[c] + b[c]

    Cin, Cout = params["w1"].shape[1], params["w1"].shape[0]
    if stride != 1 or Cin != Cout:
        identity = bn(conv(x, params["ws"], stride, 0),
                      params["gs"], params["bs"], params["ms"], params["vs"])
    else:
        identity = x
    out = conv(x, params["w1"], stride, 1)
    out = jax.nn.relu(bn(out, params["g1"], params["b1"], params["m1"], params["v1"]))
    out = conv(out, params["w2"], 1, 1)
    out = bn(out, params["g2"], params["b2"], params["m2"], params["v2"])
    return jax.nn.relu(out + identity)


# ---------------------------------------------------------------------------
# Deterministic parameter init (synthetic, mirrors nn.Module shapes)
# ---------------------------------------------------------------------------
def make_params(key, in_channel, out_channel, with_projection):
    ks = jax.random.split(key, 16)
    p = {
        "w1": 0.1 * jax.random.normal(ks[0], (out_channel, in_channel, 3, 3), jnp.float32),
        "g1": 1.0 + 0.1 * jax.random.normal(ks[1], (out_channel,), jnp.float32),
        "b1": 0.1 * jax.random.normal(ks[2], (out_channel,), jnp.float32),
        "m1": 0.1 * jax.random.normal(ks[3], (out_channel,), jnp.float32),
        "v1": jax.random.uniform(ks[4], (out_channel,), jnp.float32, 0.5, 1.5),
        "w2": 0.1 * jax.random.normal(ks[5], (out_channel, out_channel, 3, 3), jnp.float32),
        "g2": 1.0 + 0.1 * jax.random.normal(ks[6], (out_channel,), jnp.float32),
        "b2": 0.1 * jax.random.normal(ks[7], (out_channel,), jnp.float32),
        "m2": 0.1 * jax.random.normal(ks[8], (out_channel,), jnp.float32),
        "v2": jax.random.uniform(ks[9], (out_channel,), jnp.float32, 0.5, 1.5),
    }
    if with_projection:
        p.update({
            "ws": 0.1 * jax.random.normal(ks[10], (out_channel, in_channel, 1, 1), jnp.float32),
            "gs": 1.0 + 0.1 * jax.random.normal(ks[11], (out_channel,), jnp.float32),
            "bs": 0.1 * jax.random.normal(ks[12], (out_channel,), jnp.float32),
            "ms": 0.1 * jax.random.normal(ks[13], (out_channel,), jnp.float32),
            "vs": jax.random.uniform(ks[14], (out_channel,), jnp.float32, 0.5, 1.5),
        })
    return p


if __name__ == "__main__":
    root = jax.random.PRNGKey(0)

    def check(B, Cin, Cout, H, W, stride, salt):
        kx, kp = jax.random.split(jax.random.fold_in(root, salt))
        x = jax.random.normal(kx, (B, Cin, H, W), jnp.float32)
        params = make_params(kp, Cin, Cout,
                             with_projection=(stride != 1 or Cin != Cout))
        out = jax.block_until_ready(resblock_forward(x, params, stride=stride))
        ref = resblock_reference(x, params, stride=stride)
        Ho = (H + 2 - 3) // stride + 1
        Wo = (W + 2 - 3) // stride + 1
        assert out.shape == (B, Cout, Ho, Wo), out.shape
        # bf16 operands (f32 accumulation) -> loosened tolerance.
        assert jnp.allclose(out, ref, atol=5e-2, rtol=5e-2), \
            float(jnp.max(jnp.abs(out - ref)))

    check(2, 4, 8, 16, 16, 1, 0)   # projection shortcut (Cin != Cout)
    check(2, 8, 8, 16, 16, 1, 1)   # identity shortcut
    check(2, 4, 8, 16, 16, 2, 2)   # strided projection shortcut

    print("KERNEL_OK")
</pallas_src>

<mosaic_0001>
module attributes {stable_mosaic.version = 11 : i64} {
  func.func @kernel(%arg0: i32, %arg1: i32, %arg2: i32, %arg3: memref<512x36xbf16, #tpu.memory_space<vmem>>, %arg4: memref<36x128xbf16, #tpu.memory_space<vmem>>, %arg5: memref<1x128xf32, #tpu.memory_space<vmem>>, %arg6: memref<512x128xbf16, #tpu.memory_space<vmem>>, %arg7: memref<512x128xf32, #tpu.memory_space<vmem>>) attributes {dimension_semantics = [#tpu.dimension_semantics<parallel>, #tpu.dimension_semantics<parallel>, #tpu.dimension_semantics<arbitrary>], iteration_bounds = array<i64: 1, 1, 1>, scalar_prefetch = 0 : i64, scratch_operands = 1 : i64, tpu.core_type = #tpu.core_type<tc>, window_params = [{transform_indices = @transform_0, window_bounds = array<i64: 512, 36>}, {transform_indices = @transform_1, window_bounds = array<i64: 36, 128>}, {transform_indices = @transform_2, window_bounds = array<i64: 1, 128>}, {transform_indices = @transform_3, window_bounds = array<i64: 512, 128>}]} {
    %c0_i32 = arith.constant 0 : i32
    %0 = arith.cmpi eq, %arg2, %c0_i32 : i32
    %1 = arith.extui %0 : i1 to i32
    %c0_i32_0 = arith.constant 0 : i32
    %2 = arith.cmpi ne, %1, %c0_i32_0 : i32
    scf.if %2 {
      %cst_10 = arith.constant 0.000000e+00 : f32
      %12 = vector.broadcast %cst_10 : f32 to vector<512x128xf32>
      %c0_11 = arith.constant 0 : index
      %c0_12 = arith.constant 0 : index
      %13 = vector.load %arg7[%c0_11, %c0_12] : memref<512x128xf32, #tpu.memory_space<vmem>>, vector<512x128xf32>
      tpu.vector_store %arg7[%c0_11, %c0_12], %12 {strides = array<i32>} : memref<512x128xf32, #tpu.memory_space<vmem>>, vector<512x128xf32>,
    } else {
    }
    %c0 = arith.constant 0 : index
    %c0_1 = arith.constant 0 : index
    %3 = vector.load %arg7[%c0, %c0_1] : memref<512x128xf32, #tpu.memory_space<vmem>>, vector<512x128xf32>
    %c0_2 = arith.constant 0 : index
    %c0_3 = arith.constant 0 : index
    %4 = vector.load %arg3[%c0_2, %c0_3] : memref<512x36xbf16, #tpu.memory_space<vmem>>, vector<512x36xbf16>
    %c0_4 = arith.constant 0 : index
    %c0_5 = arith.constant 0 : index
    %5 = vector.load %arg4[%c0_4, %c0_5] : memref<36x128xbf16, #tpu.memory_space<vmem>>, vector<36x128xbf16>
    %cst = arith.constant dense<0.000000e+00> : vector<512x128xf32>
    %6 = tpu.matmul %4, %5, %cst {dimension_numbers = #tpu.dot_dimension_numbers<[1], [0], [0], [1], [0, 0, 1, 1], [], []>} : vector<512x36xbf16>, vector<36x128xbf16>, vector<512x128xf32> -> vector<512x128xf32>
    %7 = arith.addf %3, %6 : vector<512x128xf32>
    %c0_6 = arith.constant 0 : index
    %c0_7 = arith.constant 0 : index
    %8 = vector.load %arg7[%c0_6, %c0_7] : memref<512x128xf32, #tpu.memory_space<vmem>>, vector<512x128xf32>
    tpu.vector_store %arg7[%c0_6, %c0_7], %7 {strides = array<i32>} : memref<512x128xf32, #tpu.memory_space<vmem>>, vector<512x128xf32>,
    %c0_i32_8 = arith.constant 0 : i32
    %9 = arith.cmpi eq, %arg2, %c0_i32_8 : i32
    %10 = arith.extui %9 : i1 to i32
    %c0_i32_9 = arith.constant 0 : i32
    %11 = arith.cmpi ne, %10, %c0_i32_9 : i32
    scf.if %11 {
      %c0_10 = arith.constant 0 : index
      %c0_11 = arith.constant 0 : index
      %12 = vector.load %arg7[%c0_10, %c0_11] : memref<512x128xf32, #tpu.memory_space<vmem>>, vector<512x128xf32>
      %c0_12 = arith.constant 0 : index
      %c0_13 = arith.constant 0 : index
      %13 = vector.load %arg5[%c0_12, %c0_13] : memref<1x128xf32, #tpu.memory_space<vmem>>, vector<1x128xf32>
      %14 = vector.broadcast %13 : vector<1x128xf32> to vector<512x128xf32>
      %15 = arith.addf %12, %14 : vector<512x128xf32>
      %cst_14 = arith.constant 0.000000e+00 : f32
      %16 = vector.broadcast %cst_14 : f32 to vector<512x128xf32>
      %17 = arith.maximumf %15, %16 : vector<512x128xf32>
      %18 = arith.truncf %17 : vector<512x128xf32> to vector<512x128xbf16>
      %c0_15 = arith.constant 0 : index
      %c0_16 = arith.constant 0 : index
      %19 = vector.load %arg6[%c0_15, %c0_16] : memref<512x128xbf16, #tpu.memory_space<vmem>>, vector<512x128xbf16>
      tpu.vector_store %arg6[%c0_15, %c0_16], %18 {strides = array<i32>} : memref<512x128xbf16, #tpu.memory_space<vmem>>, vector<512x128xbf16>,
    } else {
    }
    return
  }
  func.func @transform_0(%arg0: i32, %arg1: i32, %arg2: i32) -> (i32, i32) {
    %c0_i32 = arith.constant 0 : i32
    return %arg0, %arg2 : i32, i32
  }
  func.func @transform_1(%arg0: i32, %arg1: i32, %arg2: i32) -> (i32, i32) {
    %c0_i32 = arith.constant 0 : i32
    return %arg2, %arg1 : i32, i32
  }
  func.func @transform_2(%arg0: i32, %arg1: i32, %arg2: i32) -> (i32, i32) {
    %c0_i32 = arith.constant 0 : i32
    %c0_i32_0 = arith.constant 0 : i32
    return %c0_i32, %arg1 : i32, i32
  }
  func.func @transform_3(%arg0: i32, %arg1: i32, %arg2: i32) -> (i32, i32) {
    %c0_i32 = arith.constant 0 : i32
    return %arg0, %arg1 : i32, i32
  }
}

module attributes {stable_mosaic.version = 11 : i64} {
  func.func @kernel(%arg0: i32, %arg1: i32, %arg2: i32, %arg3: memref<512x72xbf16, #tpu.memory_space<vmem>>, %arg4: memref<72x128xbf16, #tpu.memory_space<vmem>>, %arg5: memref<512x4xbf16, #tpu.memory_space<vmem>>, %arg6: memref<4x128xbf16, #tpu.memory_space<vmem>>, %arg7: memref<1x128xf32, #tpu.memory_space<vmem>>, %arg8: memref<512x128xf32, #tpu.memory_space<vmem>>, %arg9: memref<512x128xf32, #tpu.memory_space<vmem>>) attributes {dimension_semantics = [#tpu.dimension_semantics<parallel>, #tpu.dimension_semantics<parallel>, #tpu.dimension_semantics<arbitrary>], iteration_bounds = array<i64: 1, 1, 1>, scalar_prefetch = 0 : i64, scratch_operands = 1 : i64, tpu.core_type = #tpu.core_type<tc>, window_params = [{transform_indices = @transform_0, window_bounds = array<i64: 512, 72>}, {transform_indices = @transform_1, window_bounds = array<i64: 72, 128>}, {transform_indices = @transform_2, window_bounds = array<i64: 512, 4>}, {transform_indices = @transform_3, window_bounds = array<i64: 4, 128>}, {transform_indices = @transform_4, window_bounds = array<i64: 1, 128>}, {transform_indices = @transform_5, window_bounds = array<i64: 512, 128>}]} {
    %c0_i32 = arith.constant 0 : i32
    %0 = arith.cmpi eq, %arg2, %c0_i32 : i32
    %1 = arith.extui %0 : i1 to i32
    %c0_i32_0 = arith.constant 0 : i32
    %2 = arith.cmpi ne, %1, %c0_i32_0 : i32
    scf.if %2 {
      %c0_10 = arith.constant 0 : index
      %c0_11 = arith.constant 0 : index
      %12 = vector.load %arg5[%c0_10, %c0_11] : memref<512x4xbf16, #tpu.memory_space<vmem>>, vector<512x4xbf16>
      %c0_12 = arith.constant 0 : index
      %c0_13 = arith.constant 0 : index
      %13 = vector.load %arg6[%c0_12, %c0_13] : memref<4x128xbf16, #tpu.memory_space<vmem>>, vector<4x128xbf16>
      %cst_14 = arith.constant dense<0.000000e+00> : vector<512x128xf32>
      %14 = tpu.matmul %12, %13, %cst_14 {dimension_numbers = #tpu.dot_dimension_numbers<[1], [0], [0], [1], [0, 0, 1, 1], [], []>} : vector<512x4xbf16>, vector<4x128xbf16>, vector<512x128xf32> -> vector<512x128xf32>
      %c0_15 = arith.constant 0 : index
      %c0_16 = arith.constant 0 : index
      %15 = vector.load %arg9[%c0_15, %c0_16] : memref<512x128xf32, #tpu.memory_space<vmem>>, vector<512x128xf32>
      tpu.vector_store %arg9[%c0_15, %c0_16], %14 {strides = array<i32>} : memref<512x128xf32, #tpu.memory_space<vmem>>, vector<512x128xf32>,
    } else {
    }
    %c0 = arith.constant 0 : index
    %c0_1 = arith.constant 0 : index
    %3 = vector.load %arg9[%c0, %c0_1] : memref<512x128xf32, #tpu.memory_space<vmem>>, vector<512x128xf32>
    %c0_2 = arith.constant 0 : index
    %c0_3 = arith.constant 0 : index
    %4 = vector.load %arg3[%c0_2, %c0_3] : memref<512x72xbf16, #tpu.memory_space<vmem>>, vector<512x72xbf16>
    %c0_4 = arith.constant 0 : index
    %c0_5 = arith.constant 0 : index
    %5 = vector.load %arg4[%c0_4, %c0_5] : memref<72x128xbf16, #tpu.memory_space<vmem>>, vector<72x128xbf16>
    %cst = arith.constant dense<0.000000e+00> : vector<512x128xf32>
    %6 = tpu.matmul %4, %5, %cst {dimension_numbers = #tpu.dot_dimension_numbers<[1], [0], [0], [1], [0, 0, 1, 1], [], []>} : vector<512x72xbf16>, vector<72x128xbf16>, vector<512x128xf32> -> vector<512x128xf32>
    %7 = arith.addf %3, %6 : vector<512x128xf32>
    %c0_6 = arith.constant 0 : index
    %c0_7 = arith.constant 0 : index
    %8 = vector.load %arg9[%c0_6, %c0_7] : memref<512x128xf32, #tpu.memory_space<vmem>>, vector<512x128xf32>
    tpu.vector_store %arg9[%c0_6, %c0_7], %7 {strides = array<i32>} : memref<512x128xf32, #tpu.memory_space<vmem>>, vector<512x128xf32>,
    %c0_i32_8 = arith.constant 0 : i32
    %9 = arith.cmpi eq, %arg2, %c0_i32_8 : i32
    %10 = arith.extui %9 : i1 to i32
    %c0_i32_9 = arith.constant 0 : i32
    %11 = arith.cmpi ne, %10, %c0_i32_9 : i32
    scf.if %11 {
      %c0_10 = arith.constant 0 : index
      %c0_11 = arith.constant 0 : index
      %12 = vector.load %arg9[%c0_10, %c0_11] : memref<512x128xf32, #tpu.memory_space<vmem>>, vector<512x128xf32>
      %c0_12 = arith.constant 0 : index
      %c0_13 = arith.constant 0 : index
      %13 = vector.load %arg7[%c0_12, %c0_13] : memref<1x128xf32, #tpu.memory_space<vmem>>, vector<1x128xf32>
      %14 = vector.broadcast %13 : vector<1x128xf32> to vector<512x128xf32>
      %15 = arith.addf %12, %14 : vector<512x128xf32>
      %cst_14 = arith.constant 0.000000e+00 : f32
      %16 = vector.broadcast %cst_14 : f32 to vector<512x128xf32>
      %17 = arith.maximumf %15, %16 : vector<512x128xf32>
      %c0_15 = arith.constant 0 : index
      %c0_16 = arith.constant 0 : index
      %18 = vector.load %arg8[%c0_15, %c0_16] : memref<512x128xf32, #tpu.memory_space<vmem>>, vector<512x128xf32>
      tpu.vector_store %arg8[%c0_15, %c0_16], %17 {strides = array<i32>} : memref<512x128xf32, #tpu.memory_space<vmem>>, vector<512x128xf32>,
    } else {
    }
    return
  }
  func.func @transform_0(%arg0: i32, %arg1: i32, %arg2: i32) -> (i32, i32) {
    %c0_i32 = arith.constant 0 : i32
    return %arg0, %arg2 : i32, i32
  }
  func.func @transform_1(%arg0: i32, %arg1: i32, %arg2: i32) -> (i32, i32) {
    %c0_i32 = arith.constant 0 : i32
    return %arg2, %arg1 : i32, i32
  }
  func.func @transform_2(%arg0: i32, %arg1: i32, %arg2: i32) -> (i32, i32) {
    %c0_i32 = arith.constant 0 : i32
    %c0_i32_0 = arith.constant 0 : i32
    return %arg0, %c0_i32 : i32, i32
  }
  func.func @transform_3(%arg0: i32, %arg1: i32, %arg2: i32) -> (i32, i32) {
    %c0_i32 = arith.constant 0 : i32
    %c0_i32_0 = arith.constant 0 : i32
    return %c0_i32, %arg1 : i32, i32
  }
  func.func @transform_4(%arg0: i32, %arg1: i32, %arg2: i32) -> (i32, i32) {
    %c0_i32 = arith.constant 0 : i32
    %c0_i32_0 = arith.constant 0 : i32
    return %c0_i32, %arg1 : i32, i32
  }
  func.func @transform_5(%arg0: i32, %arg1: i32, %arg2: i32) -> (i32, i32) {
    %c0_i32 = arith.constant 0 : i32
    return %arg0, %arg1 : i32, i32
  }
}

</mosaic_0001>

<bundles_post_ra>
// kernel: resblock_forward.2
= control target key start
LH: loop header
LB: loop body
LE: loop exit
PB: predicated region body
PF: predicated region fallthrough
CT: control target
= control target key end

     0   :  { %vm488_vm0 = vcmask 1041408   ;;  %vm391_vm1 = vcmask 293888   ;;  %s1845_s1 = inlined_call_operand.vmem [shape: bf16[36,128], index: 1, kind: input, shape index: {}]   ;;  %s1846_s2 = inlined_call_operand.vmem [shape: f32[1,128], index: 2, kind: input, shape index: {}]   ;;  %s1847_s0 = inlined_call_operand.vmem [shape: bf16[512,36], index: 0, kind: input, shape index: {}]   ;;  %s1848_s3 = inlined_call_operand.vmem [shape: bf16[512,128], index: 3, kind: output, shape index: {}]  }
   0x1   :  { %v215_v0 = vld [vmem:[%s1845_s1 + $0x10] sm:$0x3]  ;;  %v1321_v4 = vld [vmem:[%s1845_s1 + $0x8] sm:$0xff]  ;;  %v1320_v5 = vld [vmem:[%s1845_s1] sm:$0xff] }
   0x2   :  { %v385_v1 = vunpack.c.l.b16 %v215_v0  ;;  %v1288_v6 = vld [vmem:[%s1847_s0] sm:$0xff]  ;;  %v1289_v10 = vld [vmem:[%s1847_s0 + $0x8] sm:$0xff]  ;;  %v1290_v14 = vld [vmem:[%s1847_s0 + $0x10] sm:$0xff] }
   0x3   :  { %v1296_v7 = vld [vmem:[%s1847_s0 + $0x40] sm:$0xff]  ;;  %v1297_v11 = vld [vmem:[%s1847_s0 + $0x48] sm:$0xff]  ;;  %v1298_v15 = vld [vmem:[%s1847_s0 + $0x50] sm:$0xff] }
   0x4   :  { %v388_v2 = vpack.c.b16 %v385_v1, %v385_v1  ;;  %v1304_v8 = vld [vmem:[%s1847_s0 + $0x80] sm:$0xff]  ;;  %v1305_v12 = vld [vmem:[%s1847_s0 + $0x88] sm:$0xff]  ;;  %v1306_v16 = vld [vmem:[%s1847_s0 + $0x90] sm:$0xff] }
   0x5   :  { %v1312_v9 = vld [vmem:[%s1847_s0 + $0xc0] sm:$0xff]  ;;  %v1313_v13 = vld [vmem:[%s1847_s0 + $0xc8] sm:$0xff]  ;;  %v1314_v17 = vld [vmem:[%s1847_s0 + $0xd0] sm:$0xff] }
   0x6   :  { %v490_v3 = vsel %vm488_vm0, %v388_v2, 0  ;;  %v1291_v18 = vld [vmem:[%s1847_s0 + $0x18] sm:$0xff]  ;;  %v1292_v22 = vld [vmem:[%s1847_s0 + $0x20] sm:$0xff]  ;;  %v1293_v26 = vld [vmem:[%s1847_s0 + $0x28] sm:$0xff] }
   0x7   :  { %497 = vmatpush.bf16.msra.mxu0 %v490_v3  ;;  %1513 = vmatpush.bf16.msra.mxu1 %v490_v3  ;;  %v1299_v19 = vld [vmem:[%s1847_s0 + $0x58] sm:$0xff]  ;;  %v1300_v23 = vld [vmem:[%s1847_s0 + $0x60] sm:$0xff]  ;;  %v1301_v27 = vld [vmem:[%s1847_s0 + $0x68] sm:$0xff] }
   0x8   :  { %1514 = vmatpush.bf16.msra.mxu2 %v490_v3  ;;  %1515 = vmatpush.bf16.msra.mxu3 %v490_v3  ;;  %v1307_v20 = vld [vmem:[%s1847_s0 + $0x98] sm:$0xff]  ;;  %v1308_v24 = vld [vmem:[%s1847_s0 + $0xa0] sm:$0xff]  ;;  %v1309_v28 = vld [vmem:[%s1847_s0 + $0xa8] sm:$0xff] }
   0x9   :  { %v1315_v21 = vld [vmem:[%s1847_s0 + $0xd8] sm:$0xff]  ;;  %v1316_v25 = vld [vmem:[%s1847_s0 + $0xe0] sm:$0xff]  ;;  %v1317_v29 = vld [vmem:[%s1847_s0 + $0xe8] sm:$0xff] }
   0xa   :  { %v1294_v30 = vld [vmem:[%s1847_s0 + $0x30] sm:$0xff]  ;;  %v1295_v34 = vld [vmem:[%s1847_s0 + $0x38] sm:$0xff]  ;;  %v1683_v40 = vld [vmem:[%s1846_s2] ss:$0 sm:$0xff] }
   0xb   :  { %498 = vmatpush.bf16.msra.mxu0 %v1321_v4  ;;  %1516 = vmatpush.bf16.msra.mxu1 %v1321_v4  ;;  %v1302_v31 = vld [vmem:[%s1847_s0 + $0x70] sm:$0xff]  ;;  %v1303_v35 = vld [vmem:[%s1847_s0 + $0x78] sm:$0xff] }
   0xc   :  { %1517 = vmatpush.bf16.msra.mxu2 %v1321_v4  ;;  %1518 = vmatpush.bf16.msra.mxu3 %v1321_v4  ;;  %v1310_v32 = vld [vmem:[%s1847_s0 + $0xb0] sm:$0xff]  ;;  %v1311_v36 = vld [vmem:[%s1847_s0 + $0xb8] sm:$0xff] }
   0xd   :  { %v1318_v33 = vld [vmem:[%s1847_s0 + $0xf0] sm:$0xff]  ;;  %v1319_v37 = vld [vmem:[%s1847_s0 + $0xf8] sm:$0xff] }
   0xf   :  { %499 = vmatpush.bf16.msra.mxu0 %v1320_v5  ;;  %1519 = vmatpush.bf16.msra.mxu1 %v1320_v5 }
  0x10   :  { %1520 = vmatpush.bf16.msra.mxu2 %v1320_v5  ;;  %1521 = vmatpush.bf16.msra.mxu3 %v1320_v5 }
  0x12   :  { %1256 = vmatmul.msk.bf16.vlgmr.msra.gmra.mxu0 %vm391_vm1, %v1288_v6  ;;  %1264 = vmatmul.msk.bf16.vlgmr.msra.gmra.mxu1 %vm391_vm1, %v1296_v7 }
  0x13   :  { %1272 = vmatmul.msk.bf16.vlgmr.msra.gmra.mxu2 %vm391_vm1, %v1304_v8  ;;  %1280 = vmatmul.msk.bf16.vlgmr.msra.gmra.mxu3 %vm391_vm1, %v1312_v9 }
  0x22   :  { %1257 = vmatmul.msk.bf16.gmra.mxu0 %vm391_vm1, %v1289_v10  ;;  %1265 = vmatmul.msk.bf16.gmra.mxu1 %vm391_vm1, %v1297_v11 }
  0x23   :  { %1273 = vmatmul.msk.bf16.gmra.mxu2 %vm391_vm1, %v1305_v12  ;;  %1281 = vmatmul.msk.bf16.gmra.mxu3 %vm391_vm1, %v1313_v13 }
  0x32   :  { %1258 = vmatmul.msk.bf16.gmra.mxu0 %vm391_vm1, %v1290_v14  ;;  %1266 = vmatmul.msk.bf16.gmra.mxu1 %vm391_vm1, %v1298_v15 }
  0x33   :  { %1274 = vmatmul.msk.bf16.gmra.mxu2 %vm391_vm1, %v1306_v16  ;;  %1282 = vmatmul.msk.bf16.gmra.mxu3 %vm391_vm1, %v1314_v17 }
  0x42   :  { %1259 = vmatmul.msk.bf16.gmra.mxu0 %vm391_vm1, %v1291_v18  ;;  %1267 = vmatmul.msk.bf16.gmra.mxu1 %vm391_vm1, %v1299_v19 }
  0x43   :  { %1275 = vmatmul.msk.bf16.gmra.mxu2 %vm391_vm1, %v1307_v20  ;;  %1283 = vmatmul.msk.bf16.gmra.mxu3 %vm391_vm1, %v1315_v21 }
  0x52   :  { %1260 = vmatmul.msk.bf16.gmra.mxu0 %vm391_vm1, %v1292_v22  ;;  %1268 = vmatmul.msk.bf16.gmra.mxu1 %vm391_vm1, %v1300_v23 }
  0x53   :  { %1276 = vmatmul.msk.bf16.gmra.mxu2 %vm391_vm1, %v1308_v24  ;;  %1284 = vmatmul.msk.bf16.gmra.mxu3 %vm391_vm1, %v1316_v25 }
  0x62   :  { %1261 = vmatmul.msk.bf16.gmra.mxu0 %vm391_vm1, %v1293_v26  ;;  %1269 = vmatmul.msk.bf16.gmra.mxu1 %vm391_vm1, %v1301_v27 }
  0x63   :  { %1277 = vmatmul.msk.bf16.gmra.mxu2 %vm391_vm1, %v1309_v28  ;;  %1285 = vmatmul.msk.bf16.gmra.mxu3 %vm391_vm1, %v1317_v29 }
  0x72   :  { %1262 = vmatmul.msk.bf16.gmra.mxu0 %vm391_vm1, %v1294_v30  ;;  %1270 = vmatmul.msk.bf16.gmra.mxu1 %vm391_vm1, %v1302_v31 }
  0x73   :  { %1278 = vmatmul.msk.bf16.gmra.mxu2 %vm391_vm1, %v1310_v32  ;;  %1286 = vmatmul.msk.bf16.gmra.mxu3 %vm391_vm1, %v1318_v33 }
  0x82   :  { %1263 = vmatmul.msk.bf16.gmra.mxu0 %vm391_vm1, %v1295_v34  ;;  %1271 = vmatmul.msk.bf16.gmra.mxu1 %vm391_vm1, %v1303_v35 }
  0x83   :  { %1279 = vmatmul.msk.bf16.gmra.mxu2 %vm391_vm1, %v1311_v36  ;;  %1287 = vmatmul.msk.bf16.gmra.mxu3 %vm391_vm1, %v1319_v37 }
  0x8f   :  { %v501_v38 = vpop.f32.mrf.mxu0  ;;  %v541_v39 = vpop.f32.mrf.mxu1 }
  0x90   :  { %v860_v41 = vadd.f32 %v1683_v40, %v501_v38  ;;  %v876_v42 = vadd.f32 %v1683_v40, %v541_v39 }
  0x92   :  { %v924_v49 = vmax.f32 %v860_v41, 0.0  ;;  %v940_v50 = vmax.f32 %v876_v42, 0.0 }
  0x96   :  { %v581_v43 = vpop.f32.mrf.mxu2  ;;  %v621_v44 = vpop.f32.mrf.mxu3 }
  0x97   :  { %v503_v45 = vpop.f32.mrf.mxu0  ;;  %v543_v46 = vpop.f32.mrf.mxu1  ;;  %v892_v55 = vadd.f32 %v1683_v40, %v581_v43  ;;  %v908_v56 = vadd.f32 %v1683_v40, %v621_v44 }
  0x98   :  { %v861_v47 = vadd.f32 %v1683_v40, %v503_v45  ;;  %v877_v48 = vadd.f32 %v1683_v40, %v543_v46 }
  0x99   :  { %v956_v63 = vmax.f32 %v892_v55, 0.0  ;;  %v972_v0 = vmax.f32 %v908_v56, 0.0 }
  0x9a   :  { %v925_v51 = vmax.f32 %v861_v47, 0.0  ;;  %v941_v52 = vmax.f32 %v877_v48, 0.0 }
  0x9c   :  { %v1325_v53 = vpack.c.bf16 %v925_v51, %v924_v49  ;;  %v1365_v54 = vpack.c.bf16 %v941_v52, %v940_v50 }
  0x9e   :  { %1326 = vst [vmem:[%s1848_s3] sm:$0xff] %v1325_v53   ;;  %v583_v57 = vpop.f32.mrf.mxu2  ;;  %v623_v58 = vpop.f32.mrf.mxu3 }
  0x9f   :  { %1489 = vst [vmem:[%s1848_s3 + $0x40] sm:$0xff] %v1365_v54   ;;  %v893_v59 = vadd.f32 %v1683_v40, %v583_v57  ;;  %v909_v60 = vadd.f32 %v1683_v40, %v623_v58  ;;  %v506_v61 = vpop.f32.mrf.mxu0  ;;  %v546_v62 = vpop.f32.mrf.mxu1 }
  0xa0   :  { %v862_v5 = vadd.f32 %v1683_v40, %v506_v61  ;;  %v878_v6 = vadd.f32 %v1683_v40, %v546_v62 }
  0xa1   :  { %v957_v1 = vmax.f32 %v893_v59, 0.0  ;;  %v973_v2 = vmax.f32 %v909_v60, 0.0 }
  0xa2   :  { %v926_v13 = vmax.f32 %v862_v5, 0.0  ;;  %v942_v14 = vmax.f32 %v878_v6, 0.0 }
  0xa3   :  { %v1405_v3 = vpack.c.bf16 %v957_v1, %v956_v63  ;;  %v1445_v4 = vpack.c.bf16 %v973_v2, %v972_v0 }
  0xa5   :  { %1497 = vst [vmem:[%s1848_s3 + $0x80] sm:$0xff] %v1405_v3  }
  0xa6   :  { %1505 = vst [vmem:[%s1848_s3 + $0xc0] sm:$0xff] %v1445_v4   ;;  %v586_v7 = vpop.f32.mrf.mxu2  ;;  %v626_v8 = vpop.f32.mrf.mxu3 }
  0xa7   :  { %v508_v9 = vpop.f32.mrf.mxu0  ;;  %v548_v10 = vpop.f32.mrf.mxu1  ;;  %v894_v19 = vadd.f32 %v1683_v40, %v586_v7  ;;  %v910_v20 = vadd.f32 %v1683_v40, %v626_v8 }
  0xa8   :  { %v863_v11 = vadd.f32 %v1683_v40, %v508_v9  ;;  %v879_v12 = vadd.f32 %v1683_v40, %v548_v10 }
  0xa9   :  { %v958_v27 = vmax.f32 %v894_v19, 0.0  ;;  %v974_v28 = vmax.f32 %v910_v20, 0.0 }
  0xaa   :  { %v927_v15 = vmax.f32 %v863_v11, 0.0  ;;  %v943_v16 = vmax.f32 %v879_v12, 0.0 }
  0xac   :  { %v1330_v17 = vpack.c.bf16 %v927_v15, %v926_v13  ;;  %v1370_v18 = vpack.c.bf16 %v943_v16, %v942_v14 }
  0xae   :  { %1482 = vst [vmem:[%s1848_s3 + $0x8] sm:$0xff] %v1330_v17   ;;  %v588_v21 = vpop.f32.mrf.mxu2  ;;  %v628_v22 = vpop.f32.mrf.mxu3 }
  0xaf   :  { %1490 = vst [vmem:[%s1848_s3 + $0x48] sm:$0xff] %v1370_v18   ;;  %v895_v23 = vadd.f32 %v1683_v40, %v588_v21  ;;  %v911_v24 = vadd.f32 %v1683_v40, %v628_v22  ;;  %v511_v25 = vpop.f32.mrf.mxu0  ;;  %v551_v26 = vpop.f32.mrf.mxu1 }
  0xb0   :  { %v864_v33 = vadd.f32 %v1683_v40, %v511_v25  ;;  %v880_v34 = vadd.f32 %v1683_v40, %v551_v26 }
  0xb1   :  { %v959_v29 = vmax.f32 %v895_v23, 0.0  ;;  %v975_v30 = vmax.f32 %v911_v24, 0.0 }
  0xb2   :  { %v928_v42 = vmax.f32 %v864_v33, 0.0  ;;  %v944_v43 = vmax.f32 %v880_v34, 0.0 }
  0xb3   :  { %v1410_v31 = vpack.c.bf16 %v959_v29, %v958_v27  ;;  %v1450_v32 = vpack.c.bf16 %v975_v30, %v974_v28 }
  0xb5   :  { %1498 = vst [vmem:[%s1848_s3 + $0x88] sm:$0xff] %v1410_v31  }
  0xb6   :  { %1506 = vst [vmem:[%s1848_s3 + $0xc8] sm:$0xff] %v1450_v32   ;;  %v591_v35 = vpop.f32.mrf.mxu2  ;;  %v631_v36 = vpop.f32.mrf.mxu3 }
  0xb7   :  { %v513_v37 = vpop.f32.mrf.mxu0  ;;  %v553_v38 = vpop.f32.mrf.mxu1  ;;  %v896_v48 = vadd.f32 %v1683_v40, %v591_v35  ;;  %v912_v49 = vadd.f32 %v1683_v40, %v631_v36 }
  0xb8   :  { %v865_v39 = vadd.f32 %v1683_v40, %v513_v37  ;;  %v881_v41 = vadd.f32 %v1683_v40, %v553_v38 }
  0xb9   :  { %v960_v56 = vmax.f32 %v896_v48, 0.0  ;;  %v976_v57 = vmax.f32 %v912_v49, 0.0 }
  0xba   :  { %v929_v44 = vmax.f32 %v865_v39, 0.0  ;;  %v945_v45 = vmax.f32 %v881_v41, 0.0 }
  0xbc   :  { %v1335_v46 = vpack.c.bf16 %v929_v44, %v928_v42  ;;  %v1375_v47 = vpack.c.bf16 %v945_v45, %v944_v43 }
  0xbe   :  { %1483 = vst [vmem:[%s1848_s3 + $0x10] sm:$0xff] %v1335_v46   ;;  %v593_v50 = vpop.f32.mrf.mxu2  ;;  %v633_v51 = vpop.f32.mrf.mxu3 }
  0xbf   :  { %1491 = vst [vmem:[%s1848_s3 + $0x50] sm:$0xff] %v1375_v47   ;;  %v897_v52 = vadd.f32 %v1683_v40, %v593_v50  ;;  %v913_v53 = vadd.f32 %v1683_v40, %v633_v51  ;;  %v516_v54 = vpop.f32.mrf.mxu0  ;;  %v556_v55 = vpop.f32.mrf.mxu1 }
  0xc0   :  { %v866_v62 = vadd.f32 %v1683_v40, %v516_v54  ;;  %v882_v63 = vadd.f32 %v1683_v40, %v556_v55 }
  0xc1   :  { %v961_v58 = vmax.f32 %v897_v52, 0.0  ;;  %v977_v59 = vmax.f32 %v913_v53, 0.0 }
  0xc2   :  { %v930_v6 = vmax.f32 %v866_v62, 0.0  ;;  %v946_v7 = vmax.f32 %v882_v63, 0.0 }
  0xc3   :  { %v1415_v60 = vpack.c.bf16 %v961_v58, %v960_v56  ;;  %v1455_v61 = vpack.c.bf16 %v977_v59, %v976_v57 }
  0xc5   :  { %1499 = vst [vmem:[%s1848_s3 + $0x90] sm:$0xff] %v1415_v60  }
  0xc6   :  { %1507 = vst [vmem:[%s1848_s3 + $0xd0] sm:$0xff] %v1455_v61   ;;  %v596_v0 = vpop.f32.mrf.mxu2  ;;  %v636_v1 = vpop.f32.mrf.mxu3 }
  0xc7   :  { %v518_v2 = vpop.f32.mrf.mxu0  ;;  %v558_v3 = vpop.f32.mrf.mxu1  ;;  %v898_v12 = vadd.f32 %v1683_v40, %v596_v0  ;;  %v914_v13 = vadd.f32 %v1683_v40, %v636_v1 }
  0xc8   :  { %v867_v4 = vadd.f32 %v1683_v40, %v518_v2  ;;  %v883_v5 = vadd.f32 %v1683_v40, %v558_v3 }
  0xc9   :  { %v962_v20 = vmax.f32 %v898_v12, 0.0  ;;  %v978_v21 = vmax.f32 %v914_v13, 0.0 }
  0xca   :  { %v931_v8 = vmax.f32 %v867_v4, 0.0  ;;  %v947_v9 = vmax.f32 %v883_v5, 0.0 }
  0xcc   :  { %v1340_v10 = vpack.c.bf16 %v931_v8, %v930_v6  ;;  %v1380_v11 = vpack.c.bf16 %v947_v9, %v946_v7 }
  0xce   :  { %1484 = vst [vmem:[%s1848_s3 + $0x18] sm:$0xff] %v1340_v10   ;;  %v598_v14 = vpop.f32.mrf.mxu2  ;;  %v638_v15 = vpop.f32.mrf.mxu3 }
  0xcf   :  { %1492 = vst [vmem:[%s1848_s3 + $0x58] sm:$0xff] %v1380_v11   ;;  %v899_v16 = vadd.f32 %v1683_v40, %v598_v14  ;;  %v915_v17 = vadd.f32 %v1683_v40, %v638_v15  ;;  %v521_v18 = vpop.f32.mrf.mxu0  ;;  %v561_v19 = vpop.f32.mrf.mxu1 }
  0xd0   :  { %v868_v26 = vadd.f32 %v1683_v40, %v521_v18  ;;  %v884_v27 = vadd.f32 %v1683_v40, %v561_v19 }
  0xd1   :  { %v963_v22 = vmax.f32 %v899_v16, 0.0  ;;  %v979_v23 = vmax.f32 %v915_v17, 0.0 }
  0xd2   :  { %v932_v34 = vmax.f32 %v868_v26, 0.0  ;;  %v948_v35 = vmax.f32 %v884_v27, 0.0 }
  0xd3   :  { %v1420_v24 = vpack.c.bf16 %v963_v22, %v962_v20  ;;  %v1460_v25 = vpack.c.bf16 %v979_v23, %v978_v21 }
  0xd5   :  { %1500 = vst [vmem:[%s1848_s3 + $0x98] sm:$0xff] %v1420_v24  }
  0xd6   :  { %1508 = vst [vmem:[%s1848_s3 + $0xd8] sm:$0xff] %v1460_v25   ;;  %v601_v28 = vpop.f32.mrf.mxu2  ;;  %v641_v29 = vpop.f32.mrf.mxu3 }
  0xd7   :  { %v523_v30 = vpop.f32.mrf.mxu0  ;;  %v563_v31 = vpop.f32.mrf.mxu1  ;;  %v900_v41 = vadd.f32 %v1683_v40, %v601_v28  ;;  %v916_v42 = vadd.f32 %v1683_v40, %v641_v29 }
  0xd8   :  { %v869_v32 = vadd.f32 %v1683_v40, %v523_v30  ;;  %v885_v33 = vadd.f32 %v1683_v40, %v563_v31 }
  0xd9   :  { %v964_v49 = vmax.f32 %v900_v41, 0.0  ;;  %v980_v50 = vmax.f32 %v916_v42, 0.0 }
  0xda   :  { %v933_v36 = vmax.f32 %v869_v32, 0.0  ;;  %v949_v37 = vmax.f32 %v885_v33, 0.0 }
  0xdc   :  { %v1345_v38 = vpack.c.bf16 %v933_v36, %v932_v34  ;;  %v1385_v39 = vpack.c.bf16 %v949_v37, %v948_v35 }
  0xde   :  { %1485 = vst [vmem:[%s1848_s3 + $0x20] sm:$0xff] %v1345_v38   ;;  %v603_v43 = vpop.f32.mrf.mxu2  ;;  %v643_v44 = vpop.f32.mrf.mxu3 }
  0xdf   :  { %1493 = vst [vmem:[%s1848_s3 + $0x60] sm:$0xff] %v1385_v39   ;;  %v901_v45 = vadd.f32 %v1683_v40, %v603_v43  ;;  %v917_v46 = vadd.f32 %v1683_v40, %v643_v44  ;;  %v526_v47 = vpop.f32.mrf.mxu0  ;;  %v566_v48 = vpop.f32.mrf.mxu1 }
  0xe0   :  { %v870_v55 = vadd.f32 %v1683_v40, %v526_v47  ;;  %v886_v56 = vadd.f32 %v1683_v40, %v566_v48 }
  0xe1   :  { %v965_v51 = vmax.f32 %v901_v45, 0.0  ;;  %v981_v52 = vmax.f32 %v917_v46, 0.0 }
  0xe2   :  { %v934_v63 = vmax.f32 %v870_v55, 0.0  ;;  %v950_v0 = vmax.f32 %v886_v56, 0.0 }
  0xe3   :  { %v1425_v53 = vpack.c.bf16 %v965_v51, %v964_v49  ;;  %v1465_v54 = vpack.c.bf16 %v981_v52, %v980_v50 }
  0xe5   :  { %1501 = vst [vmem:[%s1848_s3 + $0xa0] sm:$0xff] %v1425_v53  }
  0xe6   :  { %1509 = vst [vmem:[%s1848_s3 + $0xe0] sm:$0xff] %v1465_v54   ;;  %v606_v57 = vpop.f32.mrf.mxu2  ;;  %v646_v58 = vpop.f32.mrf.mxu3 }
  0xe7   :  { %v528_v59 = vpop.f32.mrf.mxu0  ;;  %v568_v60 = vpop.f32.mrf.mxu1  ;;  %v902_v5 = vadd.f32 %v1683_v40, %v606_v57  ;;  %v918_v6 = vadd.f32 %v1683_v40, %v646_v58 }
  0xe8   :  { %v871_v61 = vadd.f32 %v1683_v40, %v528_v59  ;;  %v887_v62 = vadd.f32 %v1683_v40, %v568_v60 }
  0xe9   :  { %v966_v13 = vmax.f32 %v902_v5, 0.0  ;;  %v982_v14 = vmax.f32 %v918_v6, 0.0 }
  0xea   :  { %v935_v1 = vmax.f32 %v871_v61, 0.0  ;;  %v951_v2 = vmax.f32 %v887_v62, 0.0 }
  0xec   :  { %v1350_v3 = vpack.c.bf16 %v935_v1, %v934_v63  ;;  %v1390_v4 = vpack.c.bf16 %v951_v2, %v950_v0 }
  0xee   :  { %1486 = vst [vmem:[%s1848_s3 + $0x28] sm:$0xff] %v1350_v3   ;;  %v608_v7 = vpop.f32.mrf.mxu2  ;;  %v648_v8 = vpop.f32.mrf.mxu3 }
  0xef   :  { %1494 = vst [vmem:[%s1848_s3 + $0x68] sm:$0xff] %v1390_v4   ;;  %v903_v9 = vadd.f32 %v1683_v40, %v608_v7  ;;  %v919_v10 = vadd.f32 %v1683_v40, %v648_v8  ;;  %v531_v11 = vpop.f32.mrf.mxu0  ;;  %v571_v12 = vpop.f32.mrf.mxu1 }
  0xf0   :  { %v872_v19 = vadd.f32 %v1683_v40, %v531_v11  ;;  %v888_v20 = vadd.f32 %v1683_v40, %v571_v12 }
  0xf1   :  { %v967_v15 = vmax.f32 %v903_v9, 0.0  ;;  %v983_v16 = vmax.f32 %v919_v10, 0.0 }
  0xf2   :  { %v936_v27 = vmax.f32 %v872_v19, 0.0  ;;  %v952_v28 = vmax.f32 %v888_v20, 0.0 }
  0xf3   :  { %v1430_v17 = vpack.c.bf16 %v967_v15, %v966_v13  ;;  %v1470_v18 = vpack.c.bf16 %v983_v16, %v982_v14 }
  0xf5   :  { %1502 = vst [vmem:[%s1848_s3 + $0xa8] sm:$0xff] %v1430_v17  }
  0xf6   :  { %1510 = vst [vmem:[%s1848_s3 + $0xe8] sm:$0xff] %v1470_v18   ;;  %v611_v21 = vpop.f32.mrf.mxu2  ;;  %v651_v22 = vpop.f32.mrf.mxu3 }
  0xf7   :  { %v533_v23 = vpop.f32.mrf.mxu0  ;;  %v573_v24 = vpop.f32.mrf.mxu1  ;;  %v904_v33 = vadd.f32 %v1683_v40, %v611_v21  ;;  %v920_v34 = vadd.f32 %v1683_v40, %v651_v22 }
  0xf8   :  { %v873_v25 = vadd.f32 %v1683_v40, %v533_v23  ;;  %v889_v26 = vadd.f32 %v1683_v40, %v573_v24 }
  0xf9   :  { %v968_v42 = vmax.f32 %v904_v33, 0.0  ;;  %v984_v43 = vmax.f32 %v920_v34, 0.0 }
  0xfa   :  { %v937_v29 = vmax.f32 %v873_v25, 0.0  ;;  %v953_v30 = vmax.f32 %v889_v26, 0.0 }
  0xfc   :  { %v1355_v31 = vpack.c.bf16 %v937_v29, %v936_v27  ;;  %v1395_v32 = vpack.c.bf16 %v953_v30, %v952_v28 }
  0xfe   :  { %1487 = vst [vmem:[%s1848_s3 + $0x30] sm:$0xff] %v1355_v31   ;;  %v613_v35 = vpop.f32.mrf.mxu2  ;;  %v653_v36 = vpop.f32.mrf.mxu3 }
  0xff   :  { %1495 = vst [vmem:[%s1848_s3 + $0x70] sm:$0xff] %v1395_v32   ;;  %v905_v37 = vadd.f32 %v1683_v40, %v613_v35  ;;  %v921_v38 = vadd.f32 %v1683_v40, %v653_v36  ;;  %v536_v39 = vpop.f32.mrf.mxu0  ;;  %v576_v41 = vpop.f32.mrf.mxu1 }
 0x100   :  { %v874_v48 = vadd.f32 %v1683_v40, %v536_v39  ;;  %v890_v49 = vadd.f32 %v1683_v40, %v576_v41 }
 0x101   :  { %v969_v44 = vmax.f32 %v905_v37, 0.0  ;;  %v985_v45 = vmax.f32 %v921_v38, 0.0 }
 0x102   :  { %v938_v56 = vmax.f32 %v874_v48, 0.0  ;;  %v954_v57 = vmax.f32 %v890_v49, 0.0 }
 0x103   :  { %v1435_v46 = vpack.c.bf16 %v969_v44, %v968_v42  ;;  %v1475_v47 = vpack.c.bf16 %v985_v45, %v984_v43 }
 0x105   :  { %1503 = vst [vmem:[%s1848_s3 + $0xb0] sm:$0xff] %v1435_v46  }
 0x106   :  { %1511 = vst [vmem:[%s1848_s3 + $0xf0] sm:$0xff] %v1475_v47   ;;  %v616_v50 = vpop.f32.mrf.mxu2  ;;  %v656_v51 = vpop.f32.mrf.mxu3 }
 0x107   :  { %v538_v52 = vpop.f32.mrf.mxu0  ;;  %v578_v53 = vpop.f32.mrf.mxu1  ;;  %v906_v62 = vadd.f32 %v1683_v40, %v616_v50  ;;  %v922_v63 = vadd.f32 %v1683_v40, %v656_v51 }
 0x108   :  { %v875_v54 = vadd.f32 %v1683_v40, %v538_v52  ;;  %v891_v55 = vadd.f32 %v1683_v40, %v578_v53 }
 0x109   :  { %v970_v4 = vmax.f32 %v906_v62, 0.0  ;;  %v986_v5 = vmax.f32 %v922_v63, 0.0 }
 0x10a   :  { %v939_v58 = vmax.f32 %v875_v54, 0.0  ;;  %v955_v59 = vmax.f32 %v891_v55, 0.0 }
 0x10c   :  { %v1360_v60 = vpack.c.bf16 %v939_v58, %v938_v56  ;;  %v1400_v61 = vpack.c.bf16 %v955_v59, %v954_v57 }
 0x10e   :  { %1488 = vst [vmem:[%s1848_s3 + $0x38] sm:$0xff] %v1360_v60   ;;  %v618_v0 = vpop.f32.mrf.mxu2  ;;  %v658_v1 = vpop.f32.mrf.mxu3 }
 0x10f   :  { %1496 = vst [vmem:[%s1848_s3 + $0x78] sm:$0xff] %v1400_v61   ;;  %v907_v2 = vadd.f32 %v1683_v40, %v618_v0  ;;  %v923_v3 = vadd.f32 %v1683_v40, %v658_v1 }
 0x111   :  { %v971_v6 = vmax.f32 %v907_v2, 0.0  ;;  %v987_v7 = vmax.f32 %v923_v3, 0.0 }
 0x113   :  { %v1440_v8 = vpack.c.bf16 %v971_v6, %v970_v4  ;;  %v1480_v9 = vpack.c.bf16 %v987_v7, %v986_v5 }
 0x115   :  { %1504 = vst [vmem:[%s1848_s3 + $0xb8] sm:$0xff] %v1440_v8  }
 0x116   :  { %1512 = vst [vmem:[%s1848_s3 + $0xf8] sm:$0xff] %v1480_v9  }

// kernel: resblock_forward.3
= control target key start
LH: loop header
LB: loop body
LE: loop exit
PB: predicated region body
PF: predicated region fallthrough
CT: control target
= control target key end

     0   :  { %vm347_vm0 = vcmask 1041408   ;;  %vm250_vm1 = vcmask 31744   ;;  %vm1005_vm2 = vcmask 1043456   ;;  %vm908_vm3 = vcmask 588800   ;;  %s2588_s3 = inlined_call_operand.vmem [shape: bf16[4,128], index: 3, kind: input, shape index: {}]   ;;  %s2589_s2 = inlined_call_operand.vmem [shape: bf16[512,4], index: 2, kind: input, shape index: {}]   ;;  %s2590_s1 = inlined_call_operand.vmem [shape: bf16[72,128], index: 1, kind: input, shape index: {}]   ;;  %s2591_s0 = inlined_call_operand.vmem [shape: bf16[512,72], index: 0, kind: input, shape index: {}]   ;;  %s2592_s4 = inlined_call_operand.vmem [shape: f32[1,128], index: 4, kind: input, shape index: {}]   ;;  %s2593_s5 = inlined_call_operand.vmem [shape: f32[512,128], index: 5, kind: output, shape index: {}]  }
   0x1   :  { %v89_v0 = vld [vmem:[%s2588_s3] sm:$0x3]  ;;  %v1926_v6 = vld [vmem:[%s2589_s2 + $0x88] sm:$0xff]  ;;  %v1976_v8 = vld [vmem:[%s2590_s1 + $0x18] sm:$0xff] }
   0x2   :  { %v720_v1 = vld [vmem:[%s2590_s1 + $0x20] sm:$0xf]  ;;  %v349_v2 = vsel %vm347_vm0, %v89_v0, 0  ;;  %v1975_v9 = vld [vmem:[%s2590_s1 + $0x10] sm:$0xff]  ;;  %v1974_v10 = vld [vmem:[%s2590_s1 + $0x8] sm:$0xff] }
   0x3   :  { %v1909_v3 = vld [vmem:[%s2589_s2] sm:$0xff]  ;;  %v898_v4 = vunpack.c.l.b16 %v720_v1  ;;  %358 = vmatpush.bf16.msra.mxu0 %v349_v2  ;;  %1977 = vmatpush.bf16.msra.mxu3 %v349_v2  ;;  %v1910_v11 = vld [vmem:[%s2589_s2 + $0x8] sm:$0xff]  ;;  %v1927_v12 = vld [vmem:[%s2589_s2 + $0x90] sm:$0xff] }
   0x4   :  { %v1973_v13 = vld [vmem:[%s2590_s1] sm:$0xff]  ;;  %v1911_v16 = vld [vmem:[%s2589_s2 + $0x10] sm:$0xff]  ;;  %v1928_v17 = vld [vmem:[%s2589_s2 + $0x98] sm:$0xff] }
   0x5   :  { %v903_v5 = vpack.c.b16 %v898_v4, %v898_v4  ;;  %v1941_v14 = vld [vmem:[%s2591_s0] sm:$0xff]  ;;  %v1942_v18 = vld [vmem:[%s2591_s0 + $0x8] sm:$0xff]  ;;  %v1912_v20 = vld [vmem:[%s2589_s2 + $0x18] sm:$0xff] }
   0x6   :  { %1701 = vmatmul.msk.bf16.vlgmr.msra.gmra.mxu0 %vm250_vm1, %v1909_v3  ;;  %1718 = vmatmul.msk.bf16.vlgmr.msra.gmra.mxu3 %vm250_vm1, %v1926_v6  ;;  %v1957_v15 = vld [vmem:[%s2591_s0 + $0x80] sm:$0xff]  ;;  %v1958_v19 = vld [vmem:[%s2591_s0 + $0x88] sm:$0xff]  ;;  %v1943_v22 = vld [vmem:[%s2591_s0 + $0x10] sm:$0xff] }
   0x7   :  { %v1007_v7 = vsel %vm1005_vm2, %v903_v5, 0  ;;  %v1929_v21 = vld [vmem:[%s2589_s2 + $0xa0] sm:$0xff]  ;;  %v1959_v23 = vld [vmem:[%s2591_s0 + $0x90] sm:$0xff]  ;;  %v1930_v25 = vld [vmem:[%s2589_s2 + $0xa8] sm:$0xff] }
   0x8   :  { %1012 = vmatpush.bf16.msra.mxu1 %v1007_v7  ;;  %1978 = vmatpush.bf16.msra.mxu2 %v1007_v7  ;;  %v1913_v24 = vld [vmem:[%s2589_s2 + $0x20] sm:$0xff]  ;;  %v1944_v26 = vld [vmem:[%s2591_s0 + $0x18] sm:$0xff]  ;;  %v1914_v28 = vld [vmem:[%s2589_s2 + $0x28] sm:$0xff] }
   0x9   :  { %v1960_v27 = vld [vmem:[%s2591_s0 + $0x98] sm:$0xff]  ;;  %v1931_v29 = vld [vmem:[%s2589_s2 + $0xb0] sm:$0xff]  ;;  %v1945_v30 = vld [vmem:[%s2591_s0 + $0x20] sm:$0xff] }
   0xa   :  { %v1961_v31 = vld [vmem:[%s2591_s0 + $0xa0] sm:$0xff]  ;;  %v1915_v32 = vld [vmem:[%s2589_s2 + $0x30] sm:$0xff]  ;;  %v1932_v33 = vld [vmem:[%s2589_s2 + $0xb8] sm:$0xff] }
   0xb   :  { %v1946_v34 = vld [vmem:[%s2591_s0 + $0x28] sm:$0xff]  ;;  %v1916_v36 = vld [vmem:[%s2589_s2 + $0x38] sm:$0xff]  ;;  %v1933_v37 = vld [vmem:[%s2589_s2 + $0xc0] sm:$0xff] }
   0xc   :  { %1013 = vmatpush.bf16.msra.mxu1 %v1976_v8  ;;  %1979 = vmatpush.bf16.msra.mxu2 %v1976_v8  ;;  %v1962_v35 = vld [vmem:[%s2591_s0 + $0xa8] sm:$0xff]  ;;  %v1947_v38 = vld [vmem:[%s2591_s0 + $0x30] sm:$0xff]  ;;  %v1917_v40 = vld [vmem:[%s2589_s2 + $0x40] sm:$0xff] }
   0xd   :  { %v1963_v39 = vld [vmem:[%s2591_s0 + $0xb0] sm:$0xff]  ;;  %v1934_v41 = vld [vmem:[%s2589_s2 + $0xc8] sm:$0xff]  ;;  %v1948_v43 = vld [vmem:[%s2591_s0 + $0x38] sm:$0xff] }
   0xe   :  { %v1964_v44 = vld [vmem:[%s2591_s0 + $0xb8] sm:$0xff]  ;;  %v1918_v48 = vld [vmem:[%s2589_s2 + $0x48] sm:$0xff]  ;;  %v1935_v49 = vld [vmem:[%s2589_s2 + $0xd0] sm:$0xff] }
   0xf   :  { %v2178_v51 = vld [vmem:[%s2592_s4] ss:$0 sm:$0xff]  ;;  %v1919_v1 = vld [vmem:[%s2589_s2 + $0x50] sm:$0xff]  ;;  %v1936_v2 = vld [vmem:[%s2589_s2 + $0xd8] sm:$0xff] }
  0x10   :  { %1014 = vmatpush.bf16.msra.mxu1 %v1975_v9  ;;  %1980 = vmatpush.bf16.msra.mxu2 %v1975_v9  ;;  %v1949_v52 = vld [vmem:[%s2591_s0 + $0x40] sm:$0xff]  ;;  %v1950_v6 = vld [vmem:[%s2591_s0 + $0x48] sm:$0xff] }
  0x11   :  { %v1965_v53 = vld [vmem:[%s2591_s0 + $0xc0] sm:$0xff]  ;;  %v1966_v7 = vld [vmem:[%s2591_s0 + $0xc8] sm:$0xff] }
  0x14   :  { %1015 = vmatpush.bf16.msra.mxu1 %v1974_v10  ;;  %1981 = vmatpush.bf16.msra.mxu2 %v1974_v10 }
  0x16   :  { %1702 = vmatmul.msk.bf16.gmra.mxu0 %vm250_vm1, %v1910_v11  ;;  %1719 = vmatmul.msk.bf16.gmra.mxu3 %vm250_vm1, %v1927_v12 }
  0x18   :  { %1016 = vmatpush.bf16.msra.mxu1 %v1973_v13  ;;  %1982 = vmatpush.bf16.msra.mxu2 %v1973_v13 }
  0x1b   :  { %1877 = vmatmul.msk.bf16.vlgmr.msra.gmra.mxu1 %vm908_vm3, %v1941_v14  ;;  %1893 = vmatmul.msk.bf16.vlgmr.msra.gmra.mxu2 %vm908_vm3, %v1957_v15 }
  0x26   :  { %1703 = vmatmul.msk.bf16.gmra.mxu0 %vm250_vm1, %v1911_v16  ;;  %1720 = vmatmul.msk.bf16.gmra.mxu3 %vm250_vm1, %v1928_v17 }
  0x2b   :  { %1878 = vmatmul.msk.bf16.gmra.mxu1 %vm908_vm3, %v1942_v18  ;;  %1894 = vmatmul.msk.bf16.gmra.mxu2 %vm908_vm3, %v1958_v19 }
  0x36   :  { %1704 = vmatmul.msk.bf16.gmra.mxu0 %vm250_vm1, %v1912_v20  ;;  %1721 = vmatmul.msk.bf16.gmra.mxu3 %vm250_vm1, %v1929_v21 }
  0x3b   :  { %1879 = vmatmul.msk.bf16.gmra.mxu1 %vm908_vm3, %v1943_v22  ;;  %1895 = vmatmul.msk.bf16.gmra.mxu2 %vm908_vm3, %v1959_v23  ;;  %v1920_v22 = vld [vmem:[%s2589_s2 + $0x58] sm:$0xff]  ;;  %v1937_v23 = vld [vmem:[%s2589_s2 + $0xe0] sm:$0xff] }
  0x46   :  { %1705 = vmatmul.msk.bf16.gmra.mxu0 %vm250_vm1, %v1913_v24  ;;  %1722 = vmatmul.msk.bf16.gmra.mxu3 %vm250_vm1, %v1930_v25 }
  0x4b   :  { %1880 = vmatmul.msk.bf16.gmra.mxu1 %vm908_vm3, %v1944_v26  ;;  %1896 = vmatmul.msk.bf16.gmra.mxu2 %vm908_vm3, %v1960_v27 }
  0x56   :  { %1706 = vmatmul.msk.bf16.gmra.mxu0 %vm250_vm1, %v1914_v28  ;;  %1723 = vmatmul.msk.bf16.gmra.mxu3 %vm250_vm1, %v1931_v29  ;;  %v1951_v28 = vld [vmem:[%s2591_s0 + $0x50] sm:$0xff] }
  0x57   :  { %v1967_v29 = vld [vmem:[%s2591_s0 + $0xd0] sm:$0xff] }
  0x5b   :  { %1881 = vmatmul.msk.bf16.gmra.mxu1 %vm908_vm3, %v1945_v30  ;;  %1897 = vmatmul.msk.bf16.gmra.mxu2 %vm908_vm3, %v1961_v31 }
  0x66   :  { %1707 = vmatmul.msk.bf16.gmra.mxu0 %vm250_vm1, %v1915_v32  ;;  %1724 = vmatmul.msk.bf16.gmra.mxu3 %vm250_vm1, %v1932_v33 }
  0x6b   :  { %1882 = vmatmul.msk.bf16.gmra.mxu1 %vm908_vm3, %v1946_v34  ;;  %1898 = vmatmul.msk.bf16.gmra.mxu2 %vm908_vm3, %v1962_v35 }
  0x76   :  { %1708 = vmatmul.msk.bf16.gmra.mxu0 %vm250_vm1, %v1916_v36  ;;  %1725 = vmatmul.msk.bf16.gmra.mxu3 %vm250_vm1, %v1933_v37 }
  0x7b   :  { %1883 = vmatmul.msk.bf16.gmra.mxu1 %vm908_vm3, %v1947_v38  ;;  %1899 = vmatmul.msk.bf16.gmra.mxu2 %vm908_vm3, %v1963_v39 }
  0x83   :  { %v360_v42 = vpop.f32.mrf.mxu0 }
  0x86   :  { %1709 = vmatmul.msk.bf16.gmra.mxu0 %vm250_vm1, %v1917_v40  ;;  %1726 = vmatmul.msk.bf16.gmra.mxu3 %vm250_vm1, %v1934_v41 }
  0x89   :  { %v445_v45 = vpop.f32.mrf.mxu3 }
  0x8b   :  { %1884 = vmatmul.msk.bf16.gmra.mxu1 %vm908_vm3, %v1948_v43  ;;  %1900 = vmatmul.msk.bf16.gmra.mxu2 %vm908_vm3, %v1964_v44  ;;  %v362_v46 = vpop.f32.mrf.mxu0 }
  0x91   :  { %v447_v47 = vpop.f32.mrf.mxu3 }
  0x93   :  { %v365_v50 = vpop.f32.mrf.mxu0 }
  0x96   :  { %1710 = vmatmul.msk.bf16.gmra.mxu0 %vm250_vm1, %v1918_v48  ;;  %1727 = vmatmul.msk.bf16.gmra.mxu3 %vm250_vm1, %v1935_v49 }
  0x98   :  { %v1018_v54 = vpop.f32.mrf.mxu1 }
  0x99   :  { %v1178_v55 = vadd.f32 %v1018_v54, %v360_v42  ;;  %v2187_v56 = vpop.f32.mrf.mxu3  ;;  %v1968_v54 = vld [vmem:[%s2591_s0 + $0xd8] sm:$0xff] }
  0x9b   :  { %v1377_v57 = vadd.f32 %v2178_v51, %v1178_v55  ;;  %1885 = vmatmul.msk.bf16.gmra.mxu1 %vm908_vm3, %v1949_v52  ;;  %1901 = vmatmul.msk.bf16.gmra.mxu2 %vm908_vm3, %v1965_v53  ;;  %v367_v58 = vpop.f32.mrf.mxu0  ;;  %v1952_v53 = vld [vmem:[%s2591_s0 + $0x58] sm:$0xff] }
  0x9d   :  { %v1441_v59 = vmax.f32 %v1377_v57, 0.0 }
  0x9e   :  { %v2192_v60 = vpop.f32.mrf.mxu2 }
  0x9f   :  { %1505 = vst [vmem:[%s2593_s5] sm:$0xff] %v1441_v59 }
  0xa0   :  { %v1020_v61 = vpop.f32.mrf.mxu1 }
  0xa1   :  { %v1179_v62 = vadd.f32 %v1020_v61, %v362_v46  ;;  %v2197_v63 = vpop.f32.mrf.mxu3  ;;  %v1921_v46 = vld [vmem:[%s2589_s2 + $0x60] sm:$0xff] }
  0xa3   :  { %v1378_v0 = vadd.f32 %v2178_v51, %v1179_v62  ;;  %v370_v3 = vpop.f32.mrf.mxu0 }
  0xa5   :  { %v1442_v4 = vmax.f32 %v1378_v0, 0.0 }
  0xa6   :  { %v2206_v5 = vpop.f32.mrf.mxu2  ;;  %1711 = vmatmul.msk.bf16.gmra.mxu0 %vm250_vm1, %v1919_v1  ;;  %1728 = vmatmul.msk.bf16.gmra.mxu3 %vm250_vm1, %v1936_v2 }
  0xa7   :  { %1506 = vst [vmem:[%s2593_s5 + $0x8] sm:$0xff] %v1442_v4 }
  0xa8   :  { %v1023_v8 = vpop.f32.mrf.mxu1 }
  0xa9   :  { %v1180_v9 = vadd.f32 %v1023_v8, %v365_v50  ;;  %v2219_v10 = vpop.f32.mrf.mxu3 }
  0xab   :  { %v1379_v11 = vadd.f32 %v2178_v51, %v1180_v9  ;;  %1886 = vmatmul.msk.bf16.gmra.mxu1 %vm908_vm3, %v1950_v6  ;;  %1902 = vmatmul.msk.bf16.gmra.mxu2 %vm908_vm3, %v1966_v7  ;;  %v372_v12 = vpop.f32.mrf.mxu0  ;;  %v1922_v9 = vld [vmem:[%s2589_s2 + $0x68] sm:$0xff] }
  0xad   :  { %v1443_v13 = vmax.f32 %v1379_v11, 0.0  ;;  %v1939_v11 = vld [vmem:[%s2589_s2 + $0xf0] sm:$0xff] }
  0xae   :  { %v1103_v14 = vpop.f32.mrf.mxu2 }
  0xaf   :  { %1507 = vst [vmem:[%s2593_s5 + $0x10] sm:$0xff] %v1443_v13  ;;  %v1212_v15 = vadd.f32 %v1103_v14, %v445_v45 }
  0xb0   :  { %v1025_v16 = vpop.f32.mrf.mxu1 }
  0xb1   :  { %v1411_v17 = vadd.f32 %v2178_v51, %v1212_v15  ;;  %v1181_v18 = vadd.f32 %v1025_v16, %v367_v58  ;;  %v2228_v19 = vpop.f32.mrf.mxu3  ;;  %v1953_v15 = vld [vmem:[%s2591_s0 + $0x60] sm:$0xff] }
  0xb2   :  { %v1969_v16 = vld [vmem:[%s2591_s0 + $0xe0] sm:$0xff] }
  0xb3   :  { %v1475_v20 = vmax.f32 %v1411_v17, 0.0  ;;  %v1380_v21 = vadd.f32 %v2178_v51, %v1181_v18  ;;  %v375_v24 = vpop.f32.mrf.mxu0 }
  0xb5   :  { %1539 = vst [vmem:[%s2593_s5 + $0x110] sm:$0xff] %v1475_v20  ;;  %v1444_v25 = vmax.f32 %v1380_v21, 0.0 }
  0xb6   :  { %v1105_v26 = vpop.f32.mrf.mxu2  ;;  %1712 = vmatmul.msk.bf16.gmra.mxu0 %vm250_vm1, %v1920_v22  ;;  %1729 = vmatmul.msk.bf16.gmra.mxu3 %vm250_vm1, %v1937_v23 }
  0xb7   :  { %1508 = vst [vmem:[%s2593_s5 + $0x18] sm:$0xff] %v1444_v25  ;;  %v1213_v27 = vadd.f32 %v1105_v26, %v447_v47  ;;  %v1938_v47 = vld [vmem:[%s2589_s2 + $0xe8] sm:$0xff] }
  0xb8   :  { %v1028_v30 = vpop.f32.mrf.mxu1 }
  0xb9   :  { %v1412_v31 = vadd.f32 %v2178_v51, %v1213_v27  ;;  %v1182_v32 = vadd.f32 %v1028_v30, %v370_v3  ;;  %v2252_v33 = vpop.f32.mrf.mxu3 }
  0xbb   :  { %v1476_v34 = vmax.f32 %v1412_v31, 0.0  ;;  %v1381_v35 = vadd.f32 %v2178_v51, %v1182_v32  ;;  %1887 = vmatmul.msk.bf16.gmra.mxu1 %vm908_vm3, %v1951_v28  ;;  %1903 = vmatmul.msk.bf16.gmra.mxu2 %vm908_vm3, %v1967_v29  ;;  %v377_v36 = vpop.f32.mrf.mxu0 }
  0xbd   :  { %1540 = vst [vmem:[%s2593_s5 + $0x118] sm:$0xff] %v1476_v34  ;;  %v1445_v37 = vmax.f32 %v1381_v35, 0.0  ;;  %v1923_v34 = vld [vmem:[%s2589_s2 + $0x70] sm:$0xff]  ;;  %v1940_v35 = vld [vmem:[%s2589_s2 + $0xf8] sm:$0xff] }
  0xbe   :  { %v1108_v38 = vpop.f32.mrf.mxu2 }
  0xbf   :  { %1509 = vst [vmem:[%s2593_s5 + $0x20] sm:$0xff] %v1445_v37  ;;  %v1214_v39 = vadd.f32 %v1108_v38, %v2187_v56 }
  0xc0   :  { %v1030_v40 = vpop.f32.mrf.mxu1 }
  0xc1   :  { %v1413_v41 = vadd.f32 %v2178_v51, %v1214_v39  ;;  %v1183_v42 = vadd.f32 %v1030_v40, %v372_v12  ;;  %v2265_v43 = vpop.f32.mrf.mxu3  ;;  %v1954_v39 = vld [vmem:[%s2591_s0 + $0x68] sm:$0xff] }
  0xc2   :  { %v1970_v40 = vld [vmem:[%s2591_s0 + $0xe8] sm:$0xff] }
  0xc3   :  { %v1477_v44 = vmax.f32 %v1413_v41, 0.0  ;;  %v1382_v45 = vadd.f32 %v2178_v51, %v1183_v42  ;;  %v380_v48 = vpop.f32.mrf.mxu0 }
  0xc5   :  { %1541 = vst [vmem:[%s2593_s5 + $0x120] sm:$0xff] %v1477_v44  ;;  %v1446_v49 = vmax.f32 %v1382_v45, 0.0 }
  0xc6   :  { %v1110_v50 = vpop.f32.mrf.mxu2  ;;  %1713 = vmatmul.msk.bf16.gmra.mxu0 %vm250_vm1, %v1921_v46  ;;  %1730 = vmatmul.msk.bf16.gmra.mxu3 %vm250_vm1, %v1938_v47 }
  0xc7   :  { %1510 = vst [vmem:[%s2593_s5 + $0x28] sm:$0xff] %v1446_v49  ;;  %v1215_v52 = vadd.f32 %v1110_v50, %v2197_v63 }
  0xc8   :  { %v1033_v55 = vpop.f32.mrf.mxu1 }
  0xc9   :  { %v1414_v56 = vadd.f32 %v2178_v51, %v1215_v52  ;;  %v1184_v57 = vadd.f32 %v1033_v55, %v375_v24  ;;  %v2290_v58 = vpop.f32.mrf.mxu3 }
  0xcb   :  { %v1478_v59 = vmax.f32 %v1414_v56, 0.0  ;;  %v1383_v61 = vadd.f32 %v2178_v51, %v1184_v57  ;;  %1888 = vmatmul.msk.bf16.gmra.mxu1 %vm908_vm3, %v1952_v53  ;;  %1904 = vmatmul.msk.bf16.gmra.mxu2 %vm908_vm3, %v1968_v54  ;;  %v382_v62 = vpop.f32.mrf.mxu0  ;;  %v1924_v57 = vld [vmem:[%s2589_s2 + $0x78] sm:$0xff] }
  0xcd   :  { %1542 = vst [vmem:[%s2593_s5 + $0x128] sm:$0xff] %v1478_v59  ;;  %v1447_v63 = vmax.f32 %v1383_v61, 0.0 }
  0xce   :  { %v1113_v0 = vpop.f32.mrf.mxu2 }
  0xcf   :  { %1511 = vst [vmem:[%s2593_s5 + $0x30] sm:$0xff] %v1447_v63  ;;  %v1216_v1 = vadd.f32 %v1113_v0, %v2219_v10  ;;  %v1955_v0 = vld [vmem:[%s2591_s0 + $0x70] sm:$0xff] }
  0xd0   :  { %v1035_v2 = vpop.f32.mrf.mxu1 }
  0xd1   :  { %v1415_v3 = vadd.f32 %v2178_v51, %v1216_v1  ;;  %v1185_v4 = vadd.f32 %v1035_v2, %v377_v36  ;;  %v2303_v6 = vpop.f32.mrf.mxu3  ;;  %v1971_v1 = vld [vmem:[%s2591_s0 + $0xf0] sm:$0xff] }
  0xd3   :  { %v1479_v7 = vmax.f32 %v1415_v3, 0.0  ;;  %v1384_v8 = vadd.f32 %v2178_v51, %v1185_v4  ;;  %v385_v12 = vpop.f32.mrf.mxu0 }
  0xd5   :  { %1543 = vst [vmem:[%s2593_s5 + $0x130] sm:$0xff] %v1479_v7  ;;  %v1448_v10 = vmax.f32 %v1384_v8, 0.0 }
  0xd6   :  { %v1115_v13 = vpop.f32.mrf.mxu2  ;;  %1714 = vmatmul.msk.bf16.gmra.mxu0 %vm250_vm1, %v1922_v9  ;;  %1731 = vmatmul.msk.bf16.gmra.mxu3 %vm250_vm1, %v1939_v11 }
  0xd7   :  { %1512 = vst [vmem:[%s2593_s5 + $0x38] sm:$0xff] %v1448_v10  ;;  %v1217_v14 = vadd.f32 %v1115_v13, %v2228_v19 }
  0xd8   :  { %v1038_v17 = vpop.f32.mrf.mxu1 }
  0xd9   :  { %v1416_v18 = vadd.f32 %v2178_v51, %v1217_v14  ;;  %v1186_v20 = vadd.f32 %v1038_v17, %v380_v48  ;;  %v2328_v21 = vpop.f32.mrf.mxu3 }
  0xdb   :  { %v1480_v22 = vmax.f32 %v1416_v18, 0.0  ;;  %v1385_v19 = vadd.f32 %v2178_v51, %v1186_v20  ;;  %1889 = vmatmul.msk.bf16.gmra.mxu1 %vm908_vm3, %v1953_v15  ;;  %1905 = vmatmul.msk.bf16.gmra.mxu2 %vm908_vm3, %v1969_v16  ;;  %v387_v23 = vpop.f32.mrf.mxu0  ;;  %v1925_v18 = vld [vmem:[%s2589_s2 + $0x80] sm:$0xff] }
  0xdd   :  { %1544 = vst [vmem:[%s2593_s5 + $0x138] sm:$0xff] %v1480_v22  ;;  %v1449_v24 = vmax.f32 %v1385_v19, 0.0 }
  0xde   :  { %v1118_v25 = vpop.f32.mrf.mxu2 }
  0xdf   :  { %1513 = vst [vmem:[%s2593_s5 + $0x40] sm:$0xff] %v1449_v24  ;;  %v1218_v26 = vadd.f32 %v1118_v25, %v2252_v33  ;;  %v1972_v24 = vld [vmem:[%s2591_s0 + $0xf8] sm:$0xff] }
  0xe0   :  { %v1040_v27 = vpop.f32.mrf.mxu1 }
  0xe1   :  { %v1417_v28 = vadd.f32 %v2178_v51, %v1218_v26  ;;  %v1187_v29 = vadd.f32 %v1040_v27, %v382_v62  ;;  %v2341_v30 = vpop.f32.mrf.mxu3 }
  0xe3   :  { %v1481_v31 = vmax.f32 %v1417_v28, 0.0  ;;  %v1386_v32 = vadd.f32 %v2178_v51, %v1187_v29  ;;  %v390_v36 = vpop.f32.mrf.mxu0 }
  0xe5   :  { %1545 = vst [vmem:[%s2593_s5 + $0x140] sm:$0xff] %v1481_v31  ;;  %v1450_v33 = vmax.f32 %v1386_v32, 0.0 }
  0xe6   :  { %v1120_v37 = vpop.f32.mrf.mxu2  ;;  %1715 = vmatmul.msk.bf16.gmra.mxu0 %vm250_vm1, %v1923_v34  ;;  %1732 = vmatmul.msk.bf16.gmra.mxu3 %vm250_vm1, %v1940_v35 }
  0xe7   :  { %1514 = vst [vmem:[%s2593_s5 + $0x48] sm:$0xff] %v1450_v33  ;;  %v1219_v38 = vadd.f32 %v1120_v37, %v2265_v43 }
  0xe8   :  { %v1043_v41 = vpop.f32.mrf.mxu1 }
  0xe9   :  { %v1418_v42 = vadd.f32 %v2178_v51, %v1219_v38  ;;  %v1188_v44 = vadd.f32 %v1043_v41, %v385_v12  ;;  %v2369_v47 = vpop.f32.mrf.mxu3 }
  0xeb   :  { %v1482_v45 = vmax.f32 %v1418_v42, 0.0  ;;  %v1387_v46 = vadd.f32 %v2178_v51, %v1188_v44  ;;  %1890 = vmatmul.msk.bf16.gmra.mxu1 %vm908_vm3, %v1954_v39  ;;  %1906 = vmatmul.msk.bf16.gmra.mxu2 %vm908_vm3, %v1970_v40  ;;  %v392_v43 = vpop.f32.mrf.mxu0 }
  0xed   :  { %1546 = vst [vmem:[%s2593_s5 + $0x148] sm:$0xff] %v1482_v45  ;;  %v1451_v48 = vmax.f32 %v1387_v46, 0.0 }
  0xee   :  { %v1123_v49 = vpop.f32.mrf.mxu2 }
  0xef   :  { %1515 = vst [vmem:[%s2593_s5 + $0x50] sm:$0xff] %v1451_v48  ;;  %v1220_v50 = vadd.f32 %v1123_v49, %v2290_v58 }
  0xf0   :  { %v1045_v52 = vpop.f32.mrf.mxu1 }
  0xf1   :  { %v1419_v53 = vadd.f32 %v2178_v51, %v1220_v50  ;;  %v1189_v54 = vadd.f32 %v1045_v52, %v387_v23  ;;  %v477_v63 = vpop.f32.mrf.mxu3  ;;  %v1956_v23 = vld [vmem:[%s2591_s0 + $0x78] sm:$0xff] }
  0xf3   :  { %v1483_v55 = vmax.f32 %v1419_v53, 0.0  ;;  %v1388_v56 = vadd.f32 %v2178_v51, %v1189_v54  ;;  %v395_v59 = vpop.f32.mrf.mxu0 }
  0xf5   :  { %1547 = vst [vmem:[%s2593_s5 + $0x150] sm:$0xff] %v1483_v55  ;;  %v1452_v61 = vmax.f32 %v1388_v56, 0.0 }
  0xf6   :  { %v1125_v62 = vpop.f32.mrf.mxu2  ;;  %1716 = vmatmul.msk.bf16.gmra.mxu0 %vm250_vm1, %v1924_v57 }
  0xf7   :  { %1516 = vst [vmem:[%s2593_s5 + $0x58] sm:$0xff] %v1452_v61  ;;  %v1221_v58 = vadd.f32 %v1125_v62, %v2303_v6 }
  0xf8   :  { %v1048_v2 = vpop.f32.mrf.mxu1 }
  0xf9   :  { %v1420_v3 = vadd.f32 %v2178_v51, %v1221_v58  ;;  %v1190_v4 = vadd.f32 %v1048_v2, %v390_v36  ;;  %v480_v13 = vpop.f32.mrf.mxu3 }
  0xfb   :  { %v1484_v7 = vmax.f32 %v1420_v3, 0.0  ;;  %v1389_v8 = vadd.f32 %v2178_v51, %v1190_v4  ;;  %1891 = vmatmul.msk.bf16.gmra.mxu1 %vm908_vm3, %v1955_v0  ;;  %1907 = vmatmul.msk.bf16.gmra.mxu2 %vm908_vm3, %v1971_v1  ;;  %v397_v6 = vpop.f32.mrf.mxu0 }
  0xfd   :  { %1548 = vst [vmem:[%s2593_s5 + $0x158] sm:$0xff] %v1484_v7  ;;  %v1453_v9 = vmax.f32 %v1389_v8, 0.0 }
  0xfe   :  { %v1128_v11 = vpop.f32.mrf.mxu2 }
  0xff   :  { %1517 = vst [vmem:[%s2593_s5 + $0x60] sm:$0xff] %v1453_v9  ;;  %v1222_v12 = vadd.f32 %v1128_v11, %v2328_v21 }
 0x100   :  { %v1050_v10 = vpop.f32.mrf.mxu1 }
 0x101   :  { %v1421_v14 = vadd.f32 %v2178_v51, %v1222_v12  ;;  %v1191_v15 = vadd.f32 %v1050_v10, %v392_v43  ;;  %v482_v28 = vpop.f32.mrf.mxu3 }
 0x103   :  { %v1485_v16 = vmax.f32 %v1421_v14, 0.0  ;;  %v1390_v17 = vadd.f32 %v2178_v51, %v1191_v15  ;;  %v400_v20 = vpop.f32.mrf.mxu0 }
 0x105   :  { %1549 = vst [vmem:[%s2593_s5 + $0x160] sm:$0xff] %v1485_v16  ;;  %v1454_v22 = vmax.f32 %v1390_v17, 0.0 }
 0x106   :  { %v1130_v19 = vpop.f32.mrf.mxu2  ;;  %1717 = vmatmul.msk.bf16.gmra.mxu0 %vm250_vm1, %v1925_v18 }
 0x107   :  { %1518 = vst [vmem:[%s2593_s5 + $0x68] sm:$0xff] %v1454_v22  ;;  %v1223_v21 = vadd.f32 %v1130_v19, %v2341_v30 }
 0x108   :  { %v1053_v25 = vpop.f32.mrf.mxu1 }
 0x109   :  { %v1422_v26 = vadd.f32 %v2178_v51, %v1223_v21  ;;  %v1192_v27 = vadd.f32 %v1053_v25, %v395_v59  ;;  %v485_v41 = vpop.f32.mrf.mxu3 }
 0x10b   :  { %v1486_v29 = vmax.f32 %v1422_v26, 0.0  ;;  %v1391_v31 = vadd.f32 %v2178_v51, %v1192_v27  ;;  %1892 = vmatmul.msk.bf16.gmra.mxu1 %vm908_vm3, %v1956_v23  ;;  %1908 = vmatmul.msk.bf16.gmra.mxu2 %vm908_vm3, %v1972_v24  ;;  %v402_v30 = vpop.f32.mrf.mxu0 }
 0x10d   :  { %1550 = vst [vmem:[%s2593_s5 + $0x168] sm:$0xff] %v1486_v29  ;;  %v1455_v32 = vmax.f32 %v1391_v31, 0.0 }
 0x10e   :  { %v1133_v34 = vpop.f32.mrf.mxu2 }
 0x10f   :  { %1519 = vst [vmem:[%s2593_s5 + $0x70] sm:$0xff] %v1455_v32  ;;  %v1224_v35 = vadd.f32 %v1133_v34, %v2369_v47 }
 0x110   :  { %v1055_v36 = vpop.f32.mrf.mxu1 }
 0x111   :  { %v1423_v33 = vadd.f32 %v2178_v51, %v1224_v35  ;;  %v1193_v37 = vadd.f32 %v1055_v36, %v397_v6  ;;  %v487_v54 = vpop.f32.mrf.mxu3 }
 0x113   :  { %v1487_v38 = vmax.f32 %v1423_v33, 0.0  ;;  %v1392_v39 = vadd.f32 %v2178_v51, %v1193_v37  ;;  %v405_v40 = vpop.f32.mrf.mxu0 }
 0x115   :  { %1551 = vst [vmem:[%s2593_s5 + $0x170] sm:$0xff] %v1487_v38  ;;  %v1456_v42 = vmax.f32 %v1392_v39, 0.0 }
 0x116   :  { %v1135_v44 = vpop.f32.mrf.mxu2 }
 0x117   :  { %1520 = vst [vmem:[%s2593_s5 + $0x78] sm:$0xff] %v1456_v42  ;;  %v1225_v45 = vadd.f32 %v1135_v44, %v477_v63 }
 0x118   :  { %v1058_v46 = vpop.f32.mrf.mxu1 }
 0x119   :  { %v1424_v43 = vadd.f32 %v2178_v51, %v1225_v45  ;;  %v1194_v47 = vadd.f32 %v1058_v46, %v400_v20  ;;  %v490_v3 = vpop.f32.mrf.mxu3 }
 0x11b   :  { %v1488_v48 = vmax.f32 %v1424_v43, 0.0  ;;  %v1393_v49 = vadd.f32 %v2178_v51, %v1194_v47  ;;  %v407_v50 = vpop.f32.mrf.mxu0 }
 0x11d   :  { %1552 = vst [vmem:[%s2593_s5 + $0x178] sm:$0xff] %v1488_v48  ;;  %v1457_v52 = vmax.f32 %v1393_v49, 0.0 }
 0x11e   :  { %v1138_v53 = vpop.f32.mrf.mxu2 }
 0x11f   :  { %1521 = vst [vmem:[%s2593_s5 + $0x80] sm:$0xff] %v1457_v52  ;;  %v1226_v55 = vadd.f32 %v1138_v53, %v480_v13 }
 0x120   :  { %v1060_v56 = vpop.f32.mrf.mxu1 }
 0x121   :  { %v1425_v57 = vadd.f32 %v2178_v51, %v1226_v55  ;;  %v1195_v59 = vadd.f32 %v1060_v56, %v402_v30  ;;  %v492_v16 = vpop.f32.mrf.mxu3 }
 0x123   :  { %v1489_v61 = vmax.f32 %v1425_v57, 0.0  ;;  %v1394_v62 = vadd.f32 %v2178_v51, %v1195_v59  ;;  %v410_v63 = vpop.f32.mrf.mxu0 }
 0x125   :  { %1553 = vst [vmem:[%s2593_s5 + $0x180] sm:$0xff] %v1489_v61  ;;  %v1458_v58 = vmax.f32 %v1394_v62, 0.0 }
 0x126   :  { %v1140_v0 = vpop.f32.mrf.mxu2 }
 0x127   :  { %1522 = vst [vmem:[%s2593_s5 + $0x88] sm:$0xff] %v1458_v58  ;;  %v1227_v1 = vadd.f32 %v1140_v0, %v482_v28 }
 0x128   :  { %v1063_v2 = vpop.f32.mrf.mxu1 }
 0x129   :  { %v1426_v4 = vadd.f32 %v2178_v51, %v1227_v1  ;;  %v1196_v7 = vadd.f32 %v1063_v2, %v405_v40  ;;  %v495_v29 = vpop.f32.mrf.mxu3 }
 0x12b   :  { %v1490_v8 = vmax.f32 %v1426_v4, 0.0  ;;  %v1395_v6 = vadd.f32 %v2178_v51, %v1196_v7  ;;  %v412_v9 = vpop.f32.mrf.mxu0 }
 0x12d   :  { %1554 = vst [vmem:[%s2593_s5 + $0x188] sm:$0xff] %v1490_v8  ;;  %v1459_v11 = vmax.f32 %v1395_v6, 0.0 }
 0x12e   :  { %v1143_v12 = vpop.f32.mrf.mxu2 }
 0x12f   :  { %1523 = vst [vmem:[%s2593_s5 + $0x90] sm:$0xff] %v1459_v11  ;;  %v1228_v10 = vadd.f32 %v1143_v12, %v485_v41 }
 0x130   :  { %v1065_v13 = vpop.f32.mrf.mxu1 }
 0x131   :  { %v1427_v14 = vadd.f32 %v2178_v51, %v1228_v10  ;;  %v1197_v15 = vadd.f32 %v1065_v13, %v407_v50  ;;  %v497_v41 = vpop.f32.mrf.mxu3 }
 0x133   :  { %v1491_v17 = vmax.f32 %v1427_v14, 0.0  ;;  %v1396_v18 = vadd.f32 %v2178_v51, %v1197_v15  ;;  %v415_v20 = vpop.f32.mrf.mxu0 }
 0x135   :  { %1555 = vst [vmem:[%s2593_s5 + $0x190] sm:$0xff] %v1491_v17  ;;  %v1460_v22 = vmax.f32 %v1396_v18, 0.0 }
 0x136   :  { %v1145_v19 = vpop.f32.mrf.mxu2 }
 0x137   :  { %1524 = vst [vmem:[%s2593_s5 + $0x98] sm:$0xff] %v1460_v22  ;;  %v1229_v21 = vadd.f32 %v1145_v19, %v487_v54 }
 0x138   :  { %v1068_v23 = vpop.f32.mrf.mxu1 }
 0x139   :  { %v1428_v24 = vadd.f32 %v2178_v51, %v1229_v21  ;;  %v1198_v25 = vadd.f32 %v1068_v23, %v410_v63  ;;  %v500_v54 = vpop.f32.mrf.mxu3 }
 0x13b   :  { %v1492_v26 = vmax.f32 %v1428_v24, 0.0  ;;  %v1397_v27 = vadd.f32 %v2178_v51, %v1198_v25  ;;  %v417_v28 = vpop.f32.mrf.mxu0 }
 0x13d   :  { %1556 = vst [vmem:[%s2593_s5 + $0x198] sm:$0xff] %v1492_v26  ;;  %v1461_v31 = vmax.f32 %v1397_v27, 0.0 }
 0x13e   :  { %v1148_v30 = vpop.f32.mrf.mxu2 }
 0x13f   :  { %1525 = vst [vmem:[%s2593_s5 + $0xa0] sm:$0xff] %v1461_v31  ;;  %v1230_v32 = vadd.f32 %v1148_v30, %v490_v3 }
 0x140   :  { %v1070_v34 = vpop.f32.mrf.mxu1 }
 0x141   :  { %v1429_v35 = vadd.f32 %v2178_v51, %v1230_v32  ;;  %v1199_v36 = vadd.f32 %v1070_v34, %v412_v9  ;;  %v502_v3 = vpop.f32.mrf.mxu3 }
 0x143   :  { %v1493_v33 = vmax.f32 %v1429_v35, 0.0  ;;  %v1398_v37 = vadd.f32 %v2178_v51, %v1199_v36  ;;  %v420_v38 = vpop.f32.mrf.mxu0 }
 0x145   :  { %1557 = vst [vmem:[%s2593_s5 + $0x1a0] sm:$0xff] %v1493_v33  ;;  %v1462_v39 = vmax.f32 %v1398_v37, 0.0 }
 0x146   :  { %v1150_v40 = vpop.f32.mrf.mxu2 }
 0x147   :  { %1526 = vst [vmem:[%s2593_s5 + $0xa8] sm:$0xff] %v1462_v39  ;;  %v1231_v42 = vadd.f32 %v1150_v40, %v492_v16 }
 0x148   :  { %v1073_v44 = vpop.f32.mrf.mxu1 }
 0x149   :  { %v1430_v45 = vadd.f32 %v2178_v51, %v1231_v42  ;;  %v1200_v46 = vadd.f32 %v1073_v44, %v415_v20  ;;  %v505_v17 = vpop.f32.mrf.mxu3 }
 0x14b   :  { %v1494_v43 = vmax.f32 %v1430_v45, 0.0  ;;  %v1399_v47 = vadd.f32 %v2178_v51, %v1200_v46  ;;  %v422_v48 = vpop.f32.mrf.mxu0 }
 0x14d   :  { %1558 = vst [vmem:[%s2593_s5 + $0x1a8] sm:$0xff] %v1494_v43  ;;  %v1463_v49 = vmax.f32 %v1399_v47, 0.0 }
 0x14e   :  { %v1153_v50 = vpop.f32.mrf.mxu2 }
 0x14f   :  { %1527 = vst [vmem:[%s2593_s5 + $0xb0] sm:$0xff] %v1463_v49  ;;  %v1232_v52 = vadd.f32 %v1153_v50, %v495_v29 }
 0x150   :  { %v1075_v53 = vpop.f32.mrf.mxu1 }
 0x151   :  { %v1431_v55 = vadd.f32 %v2178_v51, %v1232_v52  ;;  %v1201_v56 = vadd.f32 %v1075_v53, %v417_v28  ;;  %v507_v28 = vpop.f32.mrf.mxu3 }
 0x153   :  { %v1495_v57 = vmax.f32 %v1431_v55, 0.0  ;;  %v1400_v59 = vadd.f32 %v2178_v51, %v1201_v56  ;;  %v425_v61 = vpop.f32.mrf.mxu0 }
 0x155   :  { %1559 = vst [vmem:[%s2593_s5 + $0x1b0] sm:$0xff] %v1495_v57  ;;  %v1464_v62 = vmax.f32 %v1400_v59, 0.0 }
 0x156   :  { %v1155_v63 = vpop.f32.mrf.mxu2 }
 0x157   :  { %1528 = vst [vmem:[%s2593_s5 + $0xb8] sm:$0xff] %v1464_v62  ;;  %v1233_v58 = vadd.f32 %v1155_v63, %v497_v41 }
 0x158   :  { %v1078_v0 = vpop.f32.mrf.mxu1 }
 0x159   :  { %v1432_v1 = vadd.f32 %v2178_v51, %v1233_v58  ;;  %v1202_v2 = vadd.f32 %v1078_v0, %v420_v38  ;;  %v510_v40 = vpop.f32.mrf.mxu3 }
 0x15b   :  { %v1496_v4 = vmax.f32 %v1432_v1, 0.0  ;;  %v1401_v7 = vadd.f32 %v2178_v51, %v1202_v2  ;;  %v427_v8 = vpop.f32.mrf.mxu0 }
 0x15d   :  { %1560 = vst [vmem:[%s2593_s5 + $0x1b8] sm:$0xff] %v1496_v4  ;;  %v1465_v6 = vmax.f32 %v1401_v7, 0.0 }
 0x15e   :  { %v1158_v9 = vpop.f32.mrf.mxu2 }
 0x15f   :  { %1529 = vst [vmem:[%s2593_s5 + $0xc0] sm:$0xff] %v1465_v6  ;;  %v1234_v11 = vadd.f32 %v1158_v9, %v500_v54 }
 0x160   :  { %v1080_v12 = vpop.f32.mrf.mxu1 }
 0x161   :  { %v1433_v10 = vadd.f32 %v2178_v51, %v1234_v11  ;;  %v1203_v13 = vadd.f32 %v1080_v12, %v422_v48  ;;  %v512_v54 = vpop.f32.mrf.mxu3 }
 0x163   :  { %v1497_v14 = vmax.f32 %v1433_v10, 0.0  ;;  %v1402_v15 = vadd.f32 %v2178_v51, %v1203_v13  ;;  %v430_v16 = vpop.f32.mrf.mxu0 }
 0x165   :  { %1561 = vst [vmem:[%s2593_s5 + $0x1c0] sm:$0xff] %v1497_v14  ;;  %v1466_v18 = vmax.f32 %v1402_v15, 0.0 }
 0x166   :  { %v1160_v20 = vpop.f32.mrf.mxu2 }
 0x167   :  { %1530 = vst [vmem:[%s2593_s5 + $0xc8] sm:$0xff] %v1466_v18  ;;  %v1235_v22 = vadd.f32 %v1160_v20, %v502_v3 }
 0x168   :  { %v1083_v19 = vpop.f32.mrf.mxu1 }
 0x169   :  { %v1434_v21 = vadd.f32 %v2178_v51, %v1235_v22  ;;  %v1204_v23 = vadd.f32 %v1083_v19, %v425_v61  ;;  %v515_v7 = vpop.f32.mrf.mxu3 }
 0x16b   :  { %v1498_v24 = vmax.f32 %v1434_v21, 0.0  ;;  %v1403_v25 = vadd.f32 %v2178_v51, %v1204_v23  ;;  %v432_v26 = vpop.f32.mrf.mxu0 }
 0x16d   :  { %1562 = vst [vmem:[%s2593_s5 + $0x1c8] sm:$0xff] %v1498_v24  ;;  %v1467_v27 = vmax.f32 %v1403_v25, 0.0 }
 0x16e   :  { %v1163_v29 = vpop.f32.mrf.mxu2 }
 0x16f   :  { %1531 = vst [vmem:[%s2593_s5 + $0xd0] sm:$0xff] %v1467_v27  ;;  %v1236_v31 = vadd.f32 %v1163_v29, %v505_v17 }
 0x170   :  { %v1085_v30 = vpop.f32.mrf.mxu1 }
 0x171   :  { %v1435_v32 = vadd.f32 %v2178_v51, %v1236_v31  ;;  %v1205_v34 = vadd.f32 %v1085_v30, %v427_v8  ;;  %v517_v20 = vpop.f32.mrf.mxu3 }
 0x173   :  { %v1499_v35 = vmax.f32 %v1435_v32, 0.0  ;;  %v1404_v36 = vadd.f32 %v2178_v51, %v1205_v34  ;;  %v435_v33 = vpop.f32.mrf.mxu0 }
 0x175   :  { %1563 = vst [vmem:[%s2593_s5 + $0x1d0] sm:$0xff] %v1499_v35  ;;  %v1468_v37 = vmax.f32 %v1404_v36, 0.0 }
 0x176   :  { %v1165_v38 = vpop.f32.mrf.mxu2 }
 0x177   :  { %1532 = vst [vmem:[%s2593_s5 + $0xd8] sm:$0xff] %v1468_v37  ;;  %v1237_v39 = vadd.f32 %v1165_v38, %v507_v28 }
 0x178   :  { %v1088_v41 = vpop.f32.mrf.mxu1 }
 0x179   :  { %v1436_v42 = vadd.f32 %v2178_v51, %v1237_v39  ;;  %v1206_v44 = vadd.f32 %v1088_v41, %v430_v16 }
 0x17b   :  { %v1500_v45 = vmax.f32 %v1436_v42, 0.0  ;;  %v1405_v46 = vadd.f32 %v2178_v51, %v1206_v44  ;;  %v437_v43 = vpop.f32.mrf.mxu0 }
 0x17d   :  { %1564 = vst [vmem:[%s2593_s5 + $0x1d8] sm:$0xff] %v1500_v45  ;;  %v1469_v47 = vmax.f32 %v1405_v46, 0.0 }
 0x17e   :  { %v1168_v48 = vpop.f32.mrf.mxu2 }
 0x17f   :  { %1533 = vst [vmem:[%s2593_s5 + $0xe0] sm:$0xff] %v1469_v47  ;;  %v1238_v49 = vadd.f32 %v1168_v48, %v510_v40 }
 0x180   :  { %v1090_v50 = vpop.f32.mrf.mxu1 }
 0x181   :  { %v1437_v52 = vadd.f32 %v2178_v51, %v1238_v49  ;;  %v1207_v53 = vadd.f32 %v1090_v50, %v432_v26 }
 0x183   :  { %v1501_v55 = vmax.f32 %v1437_v52, 0.0  ;;  %v1406_v56 = vadd.f32 %v2178_v51, %v1207_v53  ;;  %v440_v57 = vpop.f32.mrf.mxu0 }
 0x184   :  { %v1210_v61 = vadd.f32 %v2192_v60, %v440_v57 }
 0x185   :  { %1565 = vst [vmem:[%s2593_s5 + $0x1e0] sm:$0xff] %v1501_v55  ;;  %v1470_v59 = vmax.f32 %v1406_v56, 0.0 }
 0x186   :  { %v1170_v62 = vpop.f32.mrf.mxu2  ;;  %v1409_v63 = vadd.f32 %v2178_v51, %v1210_v61 }
 0x187   :  { %1534 = vst [vmem:[%s2593_s5 + $0xe8] sm:$0xff] %v1470_v59  ;;  %v1239_v58 = vadd.f32 %v1170_v62, %v512_v54 }
 0x188   :  { %v1093_v0 = vpop.f32.mrf.mxu1  ;;  %v1473_v1 = vmax.f32 %v1409_v63, 0.0 }
 0x189   :  { %v1438_v2 = vadd.f32 %v2178_v51, %v1239_v58  ;;  %v1208_v3 = vadd.f32 %v1093_v0, %v435_v33 }
 0x18a   :  { %1537 = vst [vmem:[%s2593_s5 + $0x100] sm:$0xff] %v1473_v1 }
 0x18b   :  { %v1502_v4 = vmax.f32 %v1438_v2, 0.0  ;;  %v1407_v60 = vadd.f32 %v2178_v51, %v1208_v3  ;;  %v442_v8 = vpop.f32.mrf.mxu0 }
 0x18c   :  { %v1211_v9 = vadd.f32 %v2206_v5, %v442_v8 }
 0x18d   :  { %1566 = vst [vmem:[%s2593_s5 + $0x1e8] sm:$0xff] %v1502_v4  ;;  %v1471_v6 = vmax.f32 %v1407_v60, 0.0 }
 0x18e   :  { %v1173_v11 = vpop.f32.mrf.mxu2  ;;  %v1410_v12 = vadd.f32 %v2178_v51, %v1211_v9 }
 0x18f   :  { %1535 = vst [vmem:[%s2593_s5 + $0xf0] sm:$0xff] %v1471_v6  ;;  %v1240_v10 = vadd.f32 %v1173_v11, %v515_v7 }
 0x190   :  { %v1095_v13 = vpop.f32.mrf.mxu1  ;;  %v1474_v14 = vmax.f32 %v1410_v12, 0.0 }
 0x191   :  { %v1439_v15 = vadd.f32 %v2178_v51, %v1240_v10  ;;  %v1209_v16 = vadd.f32 %v1095_v13, %v437_v43 }
 0x192   :  { %1538 = vst [vmem:[%s2593_s5 + $0x108] sm:$0xff] %v1474_v14 }
 0x193   :  { %v1503_v17 = vmax.f32 %v1439_v15, 0.0  ;;  %v1408_v5 = vadd.f32 %v2178_v51, %v1209_v16 }
 0x195   :  { %1567 = vst [vmem:[%s2593_s5 + $0x1f0] sm:$0xff] %v1503_v17  ;;  %v1472_v18 = vmax.f32 %v1408_v5, 0.0 }
 0x196   :  { %v1175_v22 = vpop.f32.mrf.mxu2 }
 0x197   :  { %1536 = vst [vmem:[%s2593_s5 + $0xf8] sm:$0xff] %v1472_v18  ;;  %v1241_v19 = vadd.f32 %v1175_v22, %v517_v20 }
 0x199   :  { %v1440_v21 = vadd.f32 %v2178_v51, %v1241_v19 }
 0x19b   :  { %v1504_v23 = vmax.f32 %v1440_v21, 0.0 }
 0x19d   :  { %1568 = vst [vmem:[%s2593_s5 + $0x1f8] sm:$0xff] %v1504_v23 }

</bundles_post_ra>
